<compile_context>
chip_gen: v6e
topology: v6e:2x2x1
jax: 0.10.0
libtpu: 0.0.40
codegen_flags: <defaults>
</compile_context>

<pallas_src>
import functools

import jax
import jax.numpy as jnp
from jax import lax
from jax.experimental import pallas as pl
from jax.experimental.pallas import tpu as pltpu

_EPS = 1e-5
_INV_SQRT2 = 0.7071067811865476


def _round_up(x, m):
    return (x + m - 1) // m * m


def _erf_poly(x):
    # Abramowitz & Stegun 7.1.26 (max abs error ~1.5e-7; noise floor at the
    # 2e-4 test tolerance).  Uses only exp / mul / div, which lower on Mosaic.
    a1, a2, a3, a4, a5 = (0.254829592, -0.284496736, 1.421413741,
                          -1.453152027, 1.061405429)
    p = 0.3275911
    ax = jnp.abs(x)
    t = 1.0 / (1.0 + p * ax)
    poly = ((((a5 * t + a4) * t + a3) * t + a2) * t + a1) * t
    y = 1.0 - poly * jnp.exp(-ax * ax)
    return jnp.where(x >= 0.0, y, -y)


def _gelu_kernel(x):
    return 0.5 * x * (1.0 + _erf_poly(x * _INV_SQRT2))


def _vmem_capacity_bytes():
    # Generation-aware sizing (v5e/v6e: 128 MiB, v7x: 64 MiB per TC).  Falls
    # back to the smallest (v7x) budget if the query is unavailable.
    try:
        return int(pltpu.get_tpu_info().vmem_capacity_bytes)
    except Exception:
        return 64 * 1024 * 1024


# ---------------------------------------------------------------------------
# Kernel 1: node branch  h = gelu(LN_full(node @ w1 + b1)), lane-padded to DP.
# ---------------------------------------------------------------------------
def _node_kernel(node_ref, w1_ref, b1_ref, h_ref, *, d_out):
    n_nodes, dp = h_ref.shape
    lane_ids = lax.broadcasted_iota(jnp.int32, (1, dp), 1)
    lane_mask = (lane_ids < d_out).astype(jnp.float32)

    h = jnp.dot(node_ref[...], w1_ref[...],
                preferred_element_type=jnp.float32) + b1_ref[...]
    denom = float(n_nodes * d_out)
    # Padding lanes of h are exactly zero (w1 / b1 zero-padded), so the raw sum
    # already covers only real lanes; the centered term does need the mask.
    mu = jnp.sum(h) / denom
    hc = (h - mu) * lane_mask
    var = jnp.sum(hc * hc) / denom                 # biased, like torch layer_norm
    hn = (h - mu) * lax.rsqrt(var + _EPS)
    h_ref[...] = _gelu_kernel(hn) * lane_mask      # zero padding lanes


# ---------------------------------------------------------------------------
# Kernel 2: edge grid (stats pass / apply+scatter pass) x (edge tiles)
# ---------------------------------------------------------------------------
def _edge_kernel(src_ref,                         # SMEM (E_pad,) int32 (scalar prefetch)
                 h_hbm_ref,                       # ANY  (N, DP) f32 (node-branch output)
                 edge_ref, dst_ref,               # (tile_e, edge_dim), (1, tile_e)
                 w2e_ref, w2g_ref, b2_ref,        # (edge_dim, DP), (DP, DP), (1, DP)
                 out_ref,                         # (N, DP) resident accumulator / output
                 h_vmem, gath_ref, stats_ref, ef_cache_ref, dma_sem,
                 *, d_out, n_edges, tile_e, cache_ef, has_pad):
    p = pl.program_id(0)                          # 0: statistics pass, 1: apply+scatter
    e = pl.program_id(1)                          # edge-tile index
    n_e_tiles = pl.num_programs(1)
    n_nodes, dp = out_ref.shape

    # ---- very first grid step: land h in VMEM once (single-buffered). ----
    @pl.when((p == 0) & (e == 0))
    def _prologue():
        cp = pltpu.make_async_copy(h_hbm_ref, h_vmem, dma_sem)
        cp.start()
        cp.wait()
        stats_ref[...] = jnp.zeros_like(stats_ref)

    align = tile_e if (tile_e & (tile_e - 1)) == 0 else 8
    base = pl.multiple_of(e * tile_e, align)

    def _edge_preactivation():
        # Gather h[src] for this tile: unrolled row copies (src lives in SMEM).
        # TODO(synk): replace with a hardware vector gather (jnp.take /
        #             dynamic_gather) where the target Mosaic supports it.
        def copy_row(i):
            gath_ref[i, :] = h_vmem[src_ref[base + i], :]

        if tile_e <= 64:
            for i in range(tile_e):               # fully unrolled, zero loop overhead
                copy_row(i)
        else:
            def body(i, carry):
                copy_row(i)
                return carry
            lax.fori_loop(0, tile_e, body, 0, unroll=8)

        # Split "concat" matmul: [edge | gathered] @ w2 == edge@w2e + gath@w2g.
        return (jnp.dot(edge_ref[...], w2e_ref[...], preferred_element_type=jnp.float32)
                + jnp.dot(gath_ref[...], w2g_ref[...], preferred_element_type=jnp.float32)
                + b2_ref[...])

    def _accumulate_stats(ef):
        # Padding lanes of ef are exactly zero (w2 / b2 zero-padded columns), so
        # no lane mask is needed; padded E rows are masked out when present.
        if has_pad:
            rows = base + lax.broadcasted_iota(jnp.int32, (tile_e, 1), 0)
            efm = ef * (rows < n_edges).astype(jnp.float32)
        else:
            efm = ef
        stats_ref[0:1, :] += jnp.sum(efm, axis=0, keepdims=True)
        stats_ref[1:2, :] += jnp.sum(efm * efm, axis=0, keepdims=True)

    if cache_ef:
        # Pass 0 only: compute ef once, cache it, accumulate LN statistics.
        @pl.when(p == 0)
        def _pass0():
            ef0 = _edge_preactivation()
            ef_cache_ref[pl.ds(base, tile_e), :] = ef0
            _accumulate_stats(ef0)
    else:
        # ef cache does not fit VMEM: recompute the edge branch on both passes.
        ef_recomputed = _edge_preactivation()

        @pl.when(p == 0)
        def _pass0():
            _accumulate_stats(ef_recomputed)

    # ---- pass 1, first tile: finalize LN statistics once, init accumulator. ----
    @pl.when((p == 1) & (e == 0))
    def _pass1_init():
        denom = float(n_edges * d_out)
        mu = jnp.sum(stats_ref[0:1, :]) / denom
        ex2 = jnp.sum(stats_ref[1:2, :]) / denom
        # NOTE: E[x^2]-E[x]^2 can lose precision when |mean| >> std; acceptable
        # for post-linear activations at the 2e-4 tolerance used here.
        inv = lax.rsqrt(jnp.maximum(ex2 - mu * mu, 0.0) + _EPS)
        stats_ref[2:3, :] = jnp.broadcast_to(mu, (1, dp))
        stats_ref[3:4, :] = jnp.broadcast_to(inv, (1, dp))
        out_ref[...] = jnp.zeros_like(out_ref)

    # ---- pass 1: normalize + gelu, fused-count one-hot scatter-accumulate. ----
    @pl.when(p == 1)
    def _scatter():
        ef = ef_cache_ref[pl.ds(base, tile_e), :] if cache_ef else ef_recomputed
        lane_ids = lax.broadcasted_iota(jnp.int32, (1, dp), 1)
        lane_mask = (lane_ids < d_out).astype(jnp.float32)
        count_col = (lane_ids == d_out).astype(jnp.float32)
        efn = _gelu_kernel((ef - stats_ref[2:3, :]) * stats_ref[3:4, :])
        # Lane-dense payload: features in lanes [0, d_out), scatter count 1.0 in
        # lane d_out.  Padded E rows need no row mask here: their dst is
        # n_nodes, so their one-hot column is all-zero and they contribute
        # neither features nor count.
        payload = efn * lane_mask + count_col
        # One-hot built with the contraction axis LAST -> plain MXU matmul, no
        # transpose.  Kept in f32 (exact; within the 2e-4 test tolerance).
        node_ids = lax.broadcasted_iota(jnp.int32, (n_nodes, tile_e), 0)
        onehot_t = (node_ids == dst_ref[...]).astype(jnp.float32)   # (N, tile_e)
        out_ref[...] += jnp.dot(onehot_t, payload,
                                preferred_element_type=jnp.float32)

    # ---- last grid step: turn the (sum, count) accumulator into the mean. ----
    @pl.when((p == 1) & (e == n_e_tiles - 1))
    def _finalize():
        lane_ids = lax.broadcasted_iota(jnp.int32, (1, dp), 1)
        lane_mask = (lane_ids < d_out).astype(jnp.float32)
        count_col = (lane_ids == d_out).astype(jnp.float32)
        acc = out_ref[...]
        cnt = jnp.sum(acc * count_col, axis=1, keepdims=True)       # (N, 1)
        summed = acc * lane_mask
        # scatter_reduce('mean', include_self=False): untouched rows stay 0.
        out_ref[...] = jnp.where(cnt > 0.0, summed / jnp.maximum(cnt, 1.0),
                                 jnp.zeros_like(summed))


# ---------------------------------------------------------------------------
# Wrapper
# ---------------------------------------------------------------------------
@jax.jit
def gcn_layer(edge_features, node_features, edge_indices, w1, b1, w2, b2):
    node_features = jnp.asarray(node_features, jnp.float32)
    edge_features = jnp.asarray(edge_features, jnp.float32)
    w1 = jnp.asarray(w1, jnp.float32)
    w2 = jnp.asarray(w2, jnp.float32)
    b1 = jnp.asarray(b1, jnp.float32).reshape(1, -1)
    b2 = jnp.asarray(b2, jnp.float32).reshape(1, -1)

    n_nodes, input_dim = node_features.shape
    n_edges, edge_dim = edge_features.shape
    d_out = w1.shape[1]

    # Lane-dense padded feature width; lane d_out carries the fused scatter count.
    DP = max(128, _round_up(d_out + 1, 128))

    # ---- host-side layout plumbing: lane-dense padding, split w2 ----
    w1p = jnp.pad(w1, ((0, 0), (0, DP - d_out)))
    b1p = jnp.pad(b1, ((0, 0), (0, DP - d_out)))
    w2ep = jnp.pad(w2[:edge_dim, :], ((0, 0), (0, DP - d_out)))
    w2gp = jnp.pad(w2[edge_dim:, :], ((0, DP - d_out), (0, DP - d_out)))
    b2p = jnp.pad(b2, ((0, 0), (0, DP - d_out)))

    # ---- node branch: its own small pallas_call (whole arrays in VMEM) ----
    h = pl.pallas_call(
        functools.partial(_node_kernel, d_out=d_out),
        out_shape=jax.ShapeDtypeStruct((n_nodes, DP), jnp.float32),
        cost_estimate=pl.CostEstimate(
            flops=int(2 * n_nodes * input_dim * DP),
            transcendentals=int(n_nodes * DP),
            bytes_accessed=int(4 * (n_nodes * input_dim + input_dim * DP + DP
                                    + n_nodes * DP))),
    )(node_features, w1p, b1p)

    # ---- generation-aware edge-tile sizing / VMEM budgeting ----
    vmem_cap = _vmem_capacity_bytes()
    budget = int(0.75 * vmem_cap)

    def footprint(te, ep, cache):
        # Accounts for Pallas double-buffering every pipelined BlockSpec (x2);
        # h / ef-cache / stats / gather scratch are single-buffered scratch.
        resident = 4 * (n_nodes * DP                       # h (manual single buffer)
                        + 2 * n_nodes * DP                 # out accumulator (x2)
                        + (ep * DP if cache else 8 * DP)   # ef cache
                        + 4 * DP + te * DP)                # stats + gather scratch
        streamed = 4 * (2 * te * edge_dim + 2 * te         # edge / dst tiles (x2)
                        + 2 * (edge_dim * DP + DP * DP + DP))   # w2e, w2g, b2 (x2)
        temps = 4 * (n_nodes * te + 3 * te * DP)           # one-hot + ef/payload temps
        return resident + streamed + temps

    if n_edges <= 512:
        tile_candidates = [_round_up(max(n_edges, 8), 8)]   # single tile
    else:
        tile_candidates = [512, 256, 128]                   # lane-aligned dst tiles
    tile_e = tile_candidates[-1]
    for te in tile_candidates:
        if footprint(te, _round_up(n_edges, te), False) <= budget:
            tile_e = te
            break
    e_pad = _round_up(n_edges, tile_e)
    num_e_tiles = e_pad // tile_e
    has_pad = e_pad != n_edges
    # Cache pre-LN edge activations across the two passes whenever they fit.
    cache_ef = footprint(tile_e, e_pad, True) <= budget
    ef_rows = e_pad if cache_ef else 8

    vmem_limit = int(min(max(2 * footprint(tile_e, e_pad, cache_ef),
                             32 * 1024 * 1024),
                         int(0.9 * vmem_cap)))

    edge_pad = jnp.pad(edge_features, ((0, e_pad - n_edges), (0, 0)))
    src_pad = jnp.pad(edge_indices[:, 0].astype(jnp.int32), (0, e_pad - n_edges))
    # Padded edges get dst == n_nodes -> their one-hot column is all zero.
    dst_row = jnp.pad(edge_indices[:, 1].astype(jnp.int32), (0, e_pad - n_edges),
                      constant_values=n_nodes).reshape(1, e_pad)

    kernel = functools.partial(_edge_kernel, d_out=d_out, n_edges=n_edges,
                               tile_e=tile_e, cache_ef=cache_ef, has_pad=has_pad)

    grid_spec = pltpu.PrefetchScalarGridSpec(
        num_scalar_prefetch=1,                     # src indices -> SMEM
        grid=(2, num_e_tiles),                     # (stats / apply pass, edge tiles)
        in_specs=[
            pl.BlockSpec(memory_space=pl.ANY),                             # h (HBM)
            pl.BlockSpec((tile_e, edge_dim), lambda p, e, src: (e, 0)),    # edge tile
            pl.BlockSpec((1, tile_e),        lambda p, e, src: (0, e)),    # dst tile
            pl.BlockSpec((edge_dim, DP),     lambda p, e, src: (0, 0)),    # w2 (edge half)
            pl.BlockSpec((DP, DP),           lambda p, e, src: (0, 0)),    # w2 (gathered half)
            pl.BlockSpec((1, DP),            lambda p, e, src: (0, 0)),    # b2
        ],
        out_specs=pl.BlockSpec((n_nodes, DP), lambda p, e, src: (0, 0)),   # accumulator
        scratch_shapes=[
            pltpu.VMEM((n_nodes, DP), jnp.float32),    # h, resident (single buffer)
            pltpu.VMEM((tile_e, DP), jnp.float32),     # gathered rows, current tile
            pltpu.VMEM((4, DP), jnp.float32),          # LN stats (sum, sumsq, mu, inv)
            pltpu.VMEM((ef_rows, DP), jnp.float32),    # cached pre-LN ef (or dummy)
            pltpu.SemaphoreType.DMA(()),               # h-load DMA completion
        ],
    )

    edge_passes = 1 if cache_ef else 2
    flops = (edge_passes * 2 * e_pad * (edge_dim + DP) * DP    # concat matmuls
             + 2 * e_pad * n_nodes * DP)                       # scatter one-hot matmul
    transcendentals = e_pad * DP
    bytes_accessed = 4 * (n_nodes * DP + e_pad * edge_dim + 2 * e_pad
                          + edge_dim * DP + DP * DP + DP + n_nodes * DP)

    out_padded = pl.pallas_call(
        kernel,
        grid_spec=grid_spec,
        out_shape=jax.ShapeDtypeStruct((n_nodes, DP), jnp.float32),
        compiler_params=pltpu.CompilerParams(
            dimension_semantics=("arbitrary", "arbitrary"),
            vmem_limit_bytes=vmem_limit,
        ),
        cost_estimate=pl.CostEstimate(flops=int(flops),
                                      transcendentals=int(transcendentals),
                                      bytes_accessed=int(bytes_accessed)),
    )(src_pad, h, edge_pad, dst_row, w2ep, w2gp, b2p)

    return out_padded[:, :d_out]


# ---------------------------------------------------------------------------
# Pure-JAX reference (mirrors the PyTorch forward)
# ---------------------------------------------------------------------------
def _global_layernorm_ref(x):
    mu = jnp.mean(x)
    var = jnp.mean((x - mu) ** 2)
    return (x - mu) * lax.rsqrt(var + _EPS)


def gcn_layer_ref(edge_features, node_features, edge_indices, w1, b1, w2, b2):
    gelu = lambda x: jax.nn.gelu(x, approximate=False)
    h = node_features @ w1 + b1
    h = gelu(_global_layernorm_ref(h))
    gathered = h[edge_indices[:, 0]]
    ef = jnp.concatenate([edge_features, gathered], axis=1) @ w2 + b2
    ef = gelu(_global_layernorm_ref(ef))
    n = node_features.shape[0]
    summed = jnp.zeros((n, ef.shape[1]), jnp.float32).at[edge_indices[:, 1]].add(ef)
    count = jnp.zeros((n, 1), jnp.float32).at[edge_indices[:, 1]].add(1.0)
    return jnp.where(count > 0, summed / jnp.maximum(count, 1.0), 0.0)


if __name__ == "__main__":
    n_nodes, n_edges = 16, 32
    input_dim, edge_dim, output_dim = 32, 16, 32

    key = jax.random.PRNGKey(0)
    k = jax.random.split(key, 7)

    node_features = jax.random.normal(k[0], (n_nodes, input_dim), jnp.float32)
    edge_features = jax.random.normal(k[1], (n_edges, edge_dim), jnp.float32)
    edge_indices = jax.random.randint(k[2], (n_edges, 2), 0, n_nodes, jnp.int32)

    # nn.Linear-style init, weights stored as (in, out) so that x @ W matches x @ W^T.
    lim1 = 1.0 / jnp.sqrt(jnp.float32(input_dim))
    w1 = jax.random.uniform(k[3], (input_dim, output_dim), jnp.float32, -lim1, lim1)
    b1 = jax.random.uniform(k[4], (1, output_dim), jnp.float32, -lim1, lim1)
    lim2 = 1.0 / jnp.sqrt(jnp.float32(edge_dim + output_dim))
    w2 = jax.random.uniform(k[5], (edge_dim + output_dim, output_dim),
                            jnp.float32, -lim2, lim2)
    b2 = jax.random.uniform(k[6], (1, output_dim), jnp.float32, -lim2, lim2)

    out = gcn_layer(edge_features, node_features, edge_indices, w1, b1, w2, b2)
    out = jax.block_until_ready(out)

    ref = gcn_layer_ref(edge_features, node_features, edge_indices, w1, b1, w2, b2)
    assert out.shape == (n_nodes, output_dim)
    assert jnp.allclose(out, ref, rtol=2e-4, atol=2e-4), "mismatch vs reference"

    print("KERNEL_OK")
</pallas_src>

<mosaic_0001>
module attributes {stable_mosaic.version = 11 : i64} {
  func.func @_node_kernel(%arg0: memref<16x32xf32, #tpu.memory_space<vmem>>, %arg1: memref<32x128xf32, #tpu.memory_space<vmem>>, %arg2: memref<1x128xf32, #tpu.memory_space<vmem>>, %arg3: memref<16x128xf32, #tpu.memory_space<vmem>>) attributes {dimension_semantics = [], scalar_prefetch = 0 : i64, scratch_operands = 0 : i64, tpu.core_type = #tpu.core_type<tc>} {
    %0 = tpu.iota {dimensions = array<i32: 1>} : vector<1x128xi32>
    %c32_i32 = arith.constant 32 : i32
    %1 = vector.broadcast %c32_i32 : i32 to vector<1x128xi32>
    %2 = arith.cmpi slt, %0, %1 : vector<1x128xi32>
    %3 = arith.extui %2 : vector<1x128xi1> to vector<1x128xi32>
    %4 = arith.sitofp %3 : vector<1x128xi32> to vector<1x128xf32>
    %c0 = arith.constant 0 : index
    %c0_0 = arith.constant 0 : index
    %5 = vector.load %arg0[%c0, %c0_0] : memref<16x32xf32, #tpu.memory_space<vmem>>, vector<16x32xf32>
    %c0_1 = arith.constant 0 : index
    %c0_2 = arith.constant 0 : index
    %6 = vector.load %arg1[%c0_1, %c0_2] : memref<32x128xf32, #tpu.memory_space<vmem>>, vector<32x128xf32>
    %cst = arith.constant dense<0.000000e+00> : vector<16x128xf32>
    %7 = tpu.matmul %5, %6, %cst {dimension_numbers = #tpu.dot_dimension_numbers<[1], [0], [0], [1], [0, 0, 1, 1], [], []>} : vector<16x32xf32>, vector<32x128xf32>, vector<16x128xf32> -> vector<16x128xf32>
    %c0_3 = arith.constant 0 : index
    %c0_4 = arith.constant 0 : index
    %8 = vector.load %arg2[%c0_3, %c0_4] : memref<1x128xf32, #tpu.memory_space<vmem>>, vector<1x128xf32>
    %9 = vector.broadcast %8 : vector<1x128xf32> to vector<16x128xf32>
    %10 = arith.addf %7, %9 : vector<16x128xf32>
    %11 = vector.shape_cast %10 : vector<16x128xf32> to vector<1x16x128xf32>
    %cst_5 = arith.constant dense<0.000000e+00> : vector<1xf32>
    %12 = vector.multi_reduction <add>, %11, %cst_5 [1, 2] : vector<1x16x128xf32> to vector<1xf32>
    %13 = vector.shape_cast %12 : vector<1xf32> to vector<1x1x1xf32>
    %14 = vector.extract %13[0, 0, 0] : f32 from vector<1x1x1xf32>
    %cst_6 = arith.constant 5.120000e+02 : f32
    %15 = arith.divf %14, %cst_6 : f32
    %16 = vector.broadcast %15 : f32 to vector<16x128xf32>
    %17 = arith.subf %10, %16 : vector<16x128xf32>
    %18 = vector.broadcast %4 : vector<1x128xf32> to vector<16x128xf32>
    %19 = arith.mulf %17, %18 : vector<16x128xf32>
    %20 = arith.mulf %19, %19 : vector<16x128xf32>
    %21 = vector.shape_cast %20 : vector<16x128xf32> to vector<1x16x128xf32>
    %cst_7 = arith.constant dense<0.000000e+00> : vector<1xf32>
    %22 = vector.multi_reduction <add>, %21, %cst_7 [1, 2] : vector<1x16x128xf32> to vector<1xf32>
    %23 = vector.shape_cast %22 : vector<1xf32> to vector<1x1x1xf32>
    %24 = vector.extract %23[0, 0, 0] : f32 from vector<1x1x1xf32>
    %cst_8 = arith.constant 5.120000e+02 : f32
    %25 = arith.divf %24, %cst_8 : f32
    %26 = vector.broadcast %15 : f32 to vector<16x128xf32>
    %27 = arith.subf %10, %26 : vector<16x128xf32>
    %cst_9 = arith.constant 9.99999974E-6 : f32
    %28 = arith.addf %25, %cst_9 : f32
    %29 = math.rsqrt %28 : f32
    %30 = vector.broadcast %29 : f32 to vector<16x128xf32>
    %31 = arith.mulf %27, %30 : vector<16x128xf32>
    %cst_10 = arith.constant 5.000000e-01 : f32
    %32 = vector.broadcast %cst_10 : f32 to vector<16x128xf32>
    %33 = arith.mulf %32, %31 : vector<16x128xf32>
    %cst_11 = arith.constant 0.707106769 : f32
    %34 = vector.broadcast %cst_11 : f32 to vector<16x128xf32>
    %35 = arith.mulf %31, %34 : vector<16x128xf32>
    %36 = math.absf %35 : vector<16x128xf32>
    %cst_12 = arith.constant 0.327591091 : f32
    %37 = vector.broadcast %cst_12 : f32 to vector<16x128xf32>
    %38 = arith.mulf %37, %36 : vector<16x128xf32>
    %cst_13 = arith.constant 1.000000e+00 : f32
    %39 = vector.broadcast %cst_13 : f32 to vector<16x128xf32>
    %40 = arith.addf %39, %38 : vector<16x128xf32>
    %cst_14 = arith.constant 1.000000e+00 : f32
    %41 = vector.broadcast %cst_14 : f32 to vector<16x128xf32>
    %42 = arith.divf %41, %40 : vector<16x128xf32>
    %cst_15 = arith.constant 1.06140542 : f32
    %43 = vector.broadcast %cst_15 : f32 to vector<16x128xf32>
    %44 = arith.mulf %43, %42 : vector<16x128xf32>
    %cst_16 = arith.constant -1.45315206 : f32
    %45 = vector.broadcast %cst_16 : f32 to vector<16x128xf32>
    %46 = arith.addf %44, %45 : vector<16x128xf32>
    %47 = arith.mulf %46, %42 : vector<16x128xf32>
    %cst_17 = arith.constant 1.42141378 : f32
    %48 = vector.broadcast %cst_17 : f32 to vector<16x128xf32>
    %49 = arith.addf %47, %48 : vector<16x128xf32>
    %50 = arith.mulf %49, %42 : vector<16x128xf32>
    %cst_18 = arith.constant -0.284496725 : f32
    %51 = vector.broadcast %cst_18 : f32 to vector<16x128xf32>
    %52 = arith.addf %50, %51 : vector<16x128xf32>
    %53 = arith.mulf %52, %42 : vector<16x128xf32>
    %cst_19 = arith.constant 0.254829586 : f32
    %54 = vector.broadcast %cst_19 : f32 to vector<16x128xf32>
    %55 = arith.addf %53, %54 : vector<16x128xf32>
    %56 = arith.mulf %55, %42 : vector<16x128xf32>
    %cst_20 = arith.constant 0.000000e+00 : f32
    %57 = vector.broadcast %cst_20 : f32 to vector<16x128xf32>
    %58 = arith.subf %57, %36 : vector<16x128xf32>
    %59 = arith.mulf %58, %36 : vector<16x128xf32>
    %60 = math.exp %59 : vector<16x128xf32>
    %61 = arith.mulf %56, %60 : vector<16x128xf32>
    %cst_21 = arith.constant 1.000000e+00 : f32
    %62 = vector.broadcast %cst_21 : f32 to vector<16x128xf32>
    %63 = arith.subf %62, %61 : vector<16x128xf32>
    %cst_22 = arith.constant 0.000000e+00 : f32
    %64 = vector.broadcast %cst_22 : f32 to vector<16x128xf32>
    %65 = arith.cmpf oge, %35, %64 : vector<16x128xf32>
    %cst_23 = arith.constant 0.000000e+00 : f32
    %66 = vector.broadcast %cst_23 : f32 to vector<16x128xf32>
    %67 = arith.subf %66, %63 : vector<16x128xf32>
    %68 = arith.select %65, %63, %67 : vector<16x128xi1>, vector<16x128xf32>
    %cst_24 = arith.constant 1.000000e+00 : f32
    %69 = vector.broadcast %cst_24 : f32 to vector<16x128xf32>
    %70 = arith.addf %69, %68 : vector<16x128xf32>
    %71 = arith.mulf %33, %70 : vector<16x128xf32>
    %72 = vector.broadcast %4 : vector<1x128xf32> to vector<16x128xf32>
    %73 = arith.mulf %71, %72 : vector<16x128xf32>
    %c0_25 = arith.constant 0 : index
    %c0_26 = arith.constant 0 : index
    %74 = vector.load %arg3[%c0_25, %c0_26] : memref<16x128xf32, #tpu.memory_space<vmem>>, vector<16x128xf32>
    tpu.vector_store %arg3[%c0_25, %c0_26], %73 {strides = array<i32>} : memref<16x128xf32, #tpu.memory_space<vmem>>, vector<16x128xf32>,
    return
  }
}

module attributes {stable_mosaic.version = 11 : i64} {
  func.func @_edge_kernel(%arg0: i32, %arg1: i32, %arg2: memref<32xi32, #tpu.memory_space<smem>>, %arg3: memref<16x128xf32, #tpu.memory_space<any>>, %arg4: memref<32x16xf32, #tpu.memory_space<vmem>>, %arg5: memref<1x32xi32, #tpu.memory_space<vmem>>, %arg6: memref<16x128xf32, #tpu.memory_space<vmem>>, %arg7: memref<128x128xf32, #tpu.memory_space<vmem>>, %arg8: memref<1x128xf32, #tpu.memory_space<vmem>>, %arg9: memref<16x128xf32, #tpu.memory_space<vmem>>, %arg10: memref<16x128xf32, #tpu.memory_space<vmem>>, %arg11: memref<32x128xf32, #tpu.memory_space<vmem>>, %arg12: memref<4x128xf32, #tpu.memory_space<vmem>>, %arg13: memref<32x128xf32, #tpu.memory_space<vmem>>, %arg14: memref<!tpu.dma_semaphore, #tpu.memory_space<semaphore_mem>>) attributes {dimension_semantics = [#tpu.dimension_semantics<arbitrary>, #tpu.dimension_semantics<arbitrary>], iteration_bounds = array<i64: 2, 1>, scalar_prefetch = 1 : i64, scratch_operands = 5 : i64, tpu.core_type = #tpu.core_type<tc>, window_params = [{}, {transform_indices = @transform_1, window_bounds = array<i64: 32, 16>}, {transform_indices = @transform_2, window_bounds = array<i64: 1, 32>}, {pipeline_mode = #tpu.pipeline_mode<synchronous>, transform_indices = @transform_3, window_bounds = array<i64: 16, 128>}, {pipeline_mode = #tpu.pipeline_mode<synchronous>, transform_indices = @transform_4, window_bounds = array<i64: 128, 128>}, {pipeline_mode = #tpu.pipeline_mode<synchronous>, transform_indices = @transform_5, window_bounds = array<i64: 1, 128>}, {pipeline_mode = #tpu.pipeline_mode<synchronous>, transform_indices = @transform_6, window_bounds = array<i64: 16, 128>}]} {
    %c0_i32 = arith.constant 0 : i32
    %0 = arith.cmpi eq, %arg0, %c0_i32 : i32
    %c0_i32_0 = arith.constant 0 : i32
    %1 = arith.cmpi eq, %arg1, %c0_i32_0 : i32
    %2 = arith.andi %0, %1 : i1
    %3 = arith.extui %2 : i1 to i32
    %c0_i32_1 = arith.constant 0 : i32
    %4 = arith.cmpi ne, %3, %c0_i32_1 : i32
    scf.if %4 {
      tpu.enqueue_dma source(%arg3 : memref<16x128xf32, #tpu.memory_space<any>>) target(%arg10 : memref<16x128xf32, #tpu.memory_space<vmem>>) target_semaphore(%arg14 : memref<!tpu.dma_semaphore, #tpu.memory_space<semaphore_mem>>)
      tpu.wait_dma2 semaphore(%arg14 : memref<!tpu.dma_semaphore, #tpu.memory_space<semaphore_mem>>) src(%arg3 : memref<16x128xf32, #tpu.memory_space<any>>) dst(%arg10 : memref<16x128xf32, #tpu.memory_space<vmem>>)
      %cst = arith.constant 0.000000e+00 : f32
      %23 = vector.broadcast %cst : f32 to vector<4x128xf32>
      %c0 = arith.constant 0 : index
      %c0_11 = arith.constant 0 : index
      %24 = vector.load %arg12[%c0, %c0_11] : memref<4x128xf32, #tpu.memory_space<vmem>>, vector<4x128xf32>
      tpu.vector_store %arg12[%c0, %c0_11], %23 {strides = array<i32>} : memref<4x128xf32, #tpu.memory_space<vmem>>, vector<4x128xf32>,
    } else {
    }
    %c32_i32 = arith.constant 32 : i32
    %5 = arith.muli %arg1, %c32_i32 : i32
    %6 = tpu.assume_multiple %5, 32 : i32
    %c0_i32_2 = arith.constant 0 : i32
    %7 = arith.cmpi eq, %arg0, %c0_i32_2 : i32
    %8 = arith.extui %7 : i1 to i32
    %c0_i32_3 = arith.constant 0 : i32
    %9 = arith.cmpi ne, %8, %c0_i32_3 : i32
    scf.if %9 {
      %c0_i32_11 = arith.constant 0 : i32
      %23 = arith.addi %6, %c0_i32_11 : i32
      %24 = arith.index_cast %23 : i32 to index
      %25 = memref.load %arg2[%24] : memref<32xi32, #tpu.memory_space<smem>>
      %26 = arith.index_cast %25 : i32 to index
      %c0 = arith.constant 0 : index
      %27 = vector.load %arg10[%26, %c0] : memref<16x128xf32, #tpu.memory_space<vmem>>, vector<1x128xf32>
      %28 = vector.shape_cast %27 : vector<1x128xf32> to vector<128xf32>
      %c0_12 = arith.constant 0 : index
      %c0_13 = arith.constant 0 : index
      %29 = vector.load %arg11[%c0_12, %c0_13] : memref<32x128xf32, #tpu.memory_space<vmem>>, vector<1x128xf32>
      %30 = vector.shape_cast %29 : vector<1x128xf32> to vector<128xf32>
      %31 = vector.shape_cast %28 : vector<128xf32> to vector<1x128xf32>
      tpu.vector_store %arg11[%c0_12, %c0_13], %31 {strides = array<i32>} : memref<32x128xf32, #tpu.memory_space<vmem>>, vector<1x128xf32>,
      %c1_i32_14 = arith.constant 1 : i32
      %32 = arith.addi %6, %c1_i32_14 : i32
      %33 = arith.index_cast %32 : i32 to index
      %34 = memref.load %arg2[%33] : memref<32xi32, #tpu.memory_space<smem>>
      %35 = arith.index_cast %34 : i32 to index
      %c0_15 = arith.constant 0 : index
      %36 = vector.load %arg10[%35, %c0_15] : memref<16x128xf32, #tpu.memory_space<vmem>>, vector<1x128xf32>
      %37 = vector.shape_cast %36 : vector<1x128xf32> to vector<128xf32>
      %c1 = arith.constant 1 : index
      %c0_16 = arith.constant 0 : index
      %38 = vector.load %arg11[%c1, %c0_16] : memref<32x128xf32, #tpu.memory_space<vmem>>, vector<1x128xf32>
      %39 = vector.shape_cast %38 : vector<1x128xf32> to vector<128xf32>
      %40 = vector.shape_cast %37 : vector<128xf32> to vector<1x128xf32>
      tpu.vector_store %arg11[%c1, %c0_16], %40 {strides = array<i32>} : memref<32x128xf32, #tpu.memory_space<vmem>>, vector<1x128xf32>,
      %c2_i32 = arith.constant 2 : i32
      %41 = arith.addi %6, %c2_i32 : i32
      %42 = arith.index_cast %41 : i32 to index
      %43 = memref.load %arg2[%42] : memref<32xi32, #tpu.memory_space<smem>>
      %44 = arith.index_cast %43 : i32 to index
      %c0_17 = arith.constant 0 : index
      %45 = vector.load %arg10[%44, %c0_17] : memref<16x128xf32, #tpu.memory_space<vmem>>, vector<1x128xf32>
      %46 = vector.shape_cast %45 : vector<1x128xf32> to vector<128xf32>
      %c2 = arith.constant 2 : index
      %c0_18 = arith.constant 0 : index
      %47 = vector.load %arg11[%c2, %c0_18] : memref<32x128xf32, #tpu.memory_space<vmem>>, vector<1x128xf32>
      %48 = vector.shape_cast %47 : vector<1x128xf32> to vector<128xf32>
      %49 = vector.shape_cast %46 : vector<128xf32> to vector<1x128xf32>
      tpu.vector_store %arg11[%c2, %c0_18], %49 {strides = array<i32>} : memref<32x128xf32, #tpu.memory_space<vmem>>, vector<1x128xf32>,
      %c3_i32 = arith.constant 3 : i32
      %50 = arith.addi %6, %c3_i32 : i32
      %51 = arith.index_cast %50 : i32 to index
      %52 = memref.load %arg2[%51] : memref<32xi32, #tpu.memory_space<smem>>
      %53 = arith.index_cast %52 : i32 to index
      %c0_19 = arith.constant 0 : index
      %54 = vector.load %arg10[%53, %c0_19] : memref<16x128xf32, #tpu.memory_space<vmem>>, vector<1x128xf32>
      %55 = vector.shape_cast %54 : vector<1x128xf32> to vector<128xf32>
      %c3 = arith.constant 3 : index
      %c0_20 = arith.constant 0 : index
      %56 = vector.load %arg11[%c3, %c0_20] : memref<32x128xf32, #tpu.memory_space<vmem>>, vector<1x128xf32>
      %57 = vector.shape_cast %56 : vector<1x128xf32> to vector<128xf32>
      %58 = vector.shape_cast %55 : vector<128xf32> to vector<1x128xf32>
      tpu.vector_store %arg11[%c3, %c0_20], %58 {strides = array<i32>} : memref<32x128xf32, #tpu.memory_space<vmem>>, vector<1x128xf32>,
      %c4_i32 = arith.constant 4 : i32
      %59 = arith.addi %6, %c4_i32 : i32
      %60 = arith.index_cast %59 : i32 to index
      %61 = memref.load %arg2[%60] : memref<32xi32, #tpu.memory_space<smem>>
      %62 = arith.index_cast %61 : i32 to index
      %c0_21 = arith.constant 0 : index
      %63 = vector.load %arg10[%62, %c0_21] : memref<16x128xf32, #tpu.memory_space<vmem>>, vector<1x128xf32>
      %64 = vector.shape_cast %63 : vector<1x128xf32> to vector<128xf32>
      %c4 = arith.constant 4 : index
      %c0_22 = arith.constant 0 : index
      %65 = vector.load %arg11[%c4, %c0_22] : memref<32x128xf32, #tpu.memory_space<vmem>>, vector<1x128xf32>
      %66 = vector.shape_cast %65 : vector<1x128xf32> to vector<128xf32>
      %67 = vector.shape_cast %64 : vector<128xf32> to vector<1x128xf32>
      tpu.vector_store %arg11[%c4, %c0_22], %67 {strides = array<i32>} : memref<32x128xf32, #tpu.memory_space<vmem>>, vector<1x128xf32>,
      %c5_i32 = arith.constant 5 : i32
      %68 = arith.addi %6, %c5_i32 : i32
      %69 = arith.index_cast %68 : i32 to index
      %70 = memref.load %arg2[%69] : memref<32xi32, #tpu.memory_space<smem>>
      %71 = arith.index_cast %70 : i32 to index
      %c0_23 = arith.constant 0 : index
      %72 = vector.load %arg10[%71, %c0_23] : memref<16x128xf32, #tpu.memory_space<vmem>>, vector<1x128xf32>
      %73 = vector.shape_cast %72 : vector<1x128xf32> to vector<128xf32>
      %c5 = arith.constant 5 : index
      %c0_24 = arith.constant 0 : index
      %74 = vector.load %arg11[%c5, %c0_24] : memref<32x128xf32, #tpu.memory_space<vmem>>, vector<1x128xf32>
      %75 = vector.shape_cast %74 : vector<1x128xf32> to vector<128xf32>
      %76 = vector.shape_cast %73 : vector<128xf32> to vector<1x128xf32>
      tpu.vector_store %arg11[%c5, %c0_24], %76 {strides = array<i32>} : memref<32x128xf32, #tpu.memory_space<vmem>>, vector<1x128xf32>,
      %c6_i32 = arith.constant 6 : i32
      %77 = arith.addi %6, %c6_i32 : i32
      %78 = arith.index_cast %77 : i32 to index
      %79 = memref.load %arg2[%78] : memref<32xi32, #tpu.memory_space<smem>>
      %80 = arith.index_cast %79 : i32 to index
      %c0_25 = arith.constant 0 : index
      %81 = vector.load %arg10[%80, %c0_25] : memref<16x128xf32, #tpu.memory_space<vmem>>, vector<1x128xf32>
      %82 = vector.shape_cast %81 : vector<1x128xf32> to vector<128xf32>
      %c6 = arith.constant 6 : index
      %c0_26 = arith.constant 0 : index
      %83 = vector.load %arg11[%c6, %c0_26] : memref<32x128xf32, #tpu.memory_space<vmem>>, vector<1x128xf32>
      %84 = vector.shape_cast %83 : vector<1x128xf32> to vector<128xf32>
      %85 = vector.shape_cast %82 : vector<128xf32> to vector<1x128xf32>
      tpu.vector_store %arg11[%c6, %c0_26], %85 {strides = array<i32>} : memref<32x128xf32, #tpu.memory_space<vmem>>, vector<1x128xf32>,
      %c7_i32 = arith.constant 7 : i32
      %86 = arith.addi %6, %c7_i32 : i32
      %87 = arith.index_cast %86 : i32 to index
      %88 = memref.load %arg2[%87] : memref<32xi32, #tpu.memory_space<smem>>
      %89 = arith.index_cast %88 : i32 to index
      %c0_27 = arith.constant 0 : index
      %90 = vector.load %arg10[%89, %c0_27] : memref<16x128xf32, #tpu.memory_space<vmem>>, vector<1x128xf32>
      %91 = vector.shape_cast %90 : vector<1x128xf32> to vector<128xf32>
      %c7 = arith.constant 7 : index
      %c0_28 = arith.constant 0 : index
      %92 = vector.load %arg11[%c7, %c0_28] : memref<32x128xf32, #tpu.memory_space<vmem>>, vector<1x128xf32>
      %93 = vector.shape_cast %92 : vector<1x128xf32> to vector<128xf32>
      %94 = vector.shape_cast %91 : vector<128xf32> to vector<1x128xf32>
      tpu.vector_store %arg11[%c7, %c0_28], %94 {strides = array<i32>} : memref<32x128xf32, #tpu.memory_space<vmem>>, vector<1x128xf32>,
      %c8_i32 = arith.constant 8 : i32
      %95 = arith.addi %6, %c8_i32 : i32
      %96 = arith.index_cast %95 : i32 to index
      %97 = memref.load %arg2[%96] : memref<32xi32, #tpu.memory_space<smem>>
      %98 = arith.index_cast %97 : i32 to index
      %c0_29 = arith.constant 0 : index
      %99 = vector.load %arg10[%98, %c0_29] : memref<16x128xf32, #tpu.memory_space<vmem>>, vector<1x128xf32>
      %100 = vector.shape_cast %99 : vector<1x128xf32> to vector<128xf32>
      %c8 = arith.constant 8 : index
      %c0_30 = arith.constant 0 : index
      %101 = vector.load %arg11[%c8, %c0_30] : memref<32x128xf32, #tpu.memory_space<vmem>>, vector<1x128xf32>
      %102 = vector.shape_cast %101 : vector<1x128xf32> to vector<128xf32>
      %103 = vector.shape_cast %100 : vector<128xf32> to vector<1x128xf32>
      tpu.vector_store %arg11[%c8, %c0_30], %103 {strides = array<i32>} : memref<32x128xf32, #tpu.memory_space<vmem>>, vector<1x128xf32>,
      %c9_i32 = arith.constant 9 : i32
      %104 = arith.addi %6, %c9_i32 : i32
      %105 = arith.index_cast %104 : i32 to index
      %106 = memref.load %arg2[%105] : memref<32xi32, #tpu.memory_space<smem>>
      %107 = arith.index_cast %106 : i32 to index
      %c0_31 = arith.constant 0 : index
      %108 = vector.load %arg10[%107, %c0_31] : memref<16x128xf32, #tpu.memory_space<vmem>>, vector<1x128xf32>
      %109 = vector.shape_cast %108 : vector<1x128xf32> to vector<128xf32>
      %c9 = arith.constant 9 : index
      %c0_32 = arith.constant 0 : index
      %110 = vector.load %arg11[%c9, %c0_32] : memref<32x128xf32, #tpu.memory_space<vmem>>, vector<1x128xf32>
      %111 = vector.shape_cast %110 : vector<1x128xf32> to vector<128xf32>
      %112 = vector.shape_cast %109 : vector<128xf32> to vector<1x128xf32>
      tpu.vector_store %arg11[%c9, %c0_32], %112 {strides = array<i32>} : memref<32x128xf32, #tpu.memory_space<vmem>>, vector<1x128xf32>,
      %c10_i32 = arith.constant 10 : i32
      %113 = arith.addi %6, %c10_i32 : i32
      %114 = arith.index_cast %113 : i32 to index
      %115 = memref.load %arg2[%114] : memref<32xi32, #tpu.memory_space<smem>>
      %116 = arith.index_cast %115 : i32 to index
      %c0_33 = arith.constant 0 : index
      %117 = vector.load %arg10[%116, %c0_33] : memref<16x128xf32, #tpu.memory_space<vmem>>, vector<1x128xf32>
      %118 = vector.shape_cast %117 : vector<1x128xf32> to vector<128xf32>
      %c10 = arith.constant 10 : index
      %c0_34 = arith.constant 0 : index
      %119 = vector.load %arg11[%c10, %c0_34] : memref<32x128xf32, #tpu.memory_space<vmem>>, vector<1x128xf32>
      %120 = vector.shape_cast %119 : vector<1x128xf32> to vector<128xf32>
      %121 = vector.shape_cast %118 : vector<128xf32> to vector<1x128xf32>
      tpu.vector_store %arg11[%c10, %c0_34], %121 {strides = array<i32>} : memref<32x128xf32, #tpu.memory_space<vmem>>, vector<1x128xf32>,
      %c11_i32 = arith.constant 11 : i32
      %122 = arith.addi %6, %c11_i32 : i32
      %123 = arith.index_cast %122 : i32 to index
      %124 = memref.load %arg2[%123] : memref<32xi32, #tpu.memory_space<smem>>
      %125 = arith.index_cast %124 : i32 to index
      %c0_35 = arith.constant 0 : index
      %126 = vector.load %arg10[%125, %c0_35] : memref<16x128xf32, #tpu.memory_space<vmem>>, vector<1x128xf32>
      %127 = vector.shape_cast %126 : vector<1x128xf32> to vector<128xf32>
      %c11 = arith.constant 11 : index
      %c0_36 = arith.constant 0 : index
      %128 = vector.load %arg11[%c11, %c0_36] : memref<32x128xf32, #tpu.memory_space<vmem>>, vector<1x128xf32>
      %129 = vector.shape_cast %128 : vector<1x128xf32> to vector<128xf32>
      %130 = vector.shape_cast %127 : vector<128xf32> to vector<1x128xf32>
      tpu.vector_store %arg11[%c11, %c0_36], %130 {strides = array<i32>} : memref<32x128xf32, #tpu.memory_space<vmem>>, vector<1x128xf32>,
      %c12_i32 = arith.constant 12 : i32
      %131 = arith.addi %6, %c12_i32 : i32
      %132 = arith.index_cast %131 : i32 to index
      %133 = memref.load %arg2[%132] : memref<32xi32, #tpu.memory_space<smem>>
      %134 = arith.index_cast %133 : i32 to index
      %c0_37 = arith.constant 0 : index
      %135 = vector.load %arg10[%134, %c0_37] : memref<16x128xf32, #tpu.memory_space<vmem>>, vector<1x128xf32>
      %136 = vector.shape_cast %135 : vector<1x128xf32> to vector<128xf32>
      %c12 = arith.constant 12 : index
      %c0_38 = arith.constant 0 : index
      %137 = vector.load %arg11[%c12, %c0_38] : memref<32x128xf32, #tpu.memory_space<vmem>>, vector<1x128xf32>
      %138 = vector.shape_cast %137 : vector<1x128xf32> to vector<128xf32>
      %139 = vector.shape_cast %136 : vector<128xf32> to vector<1x128xf32>
      tpu.vector_store %arg11[%c12, %c0_38], %139 {strides = array<i32>} : memref<32x128xf32, #tpu.memory_space<vmem>>, vector<1x128xf32>,
      %c13_i32 = arith.constant 13 : i32
      %140 = arith.addi %6, %c13_i32 : i32
      %141 = arith.index_cast %140 : i32 to index
      %142 = memref.load %arg2[%141] : memref<32xi32, #tpu.memory_space<smem>>
      %143 = arith.index_cast %142 : i32 to index
      %c0_39 = arith.constant 0 : index
      %144 = vector.load %arg10[%143, %c0_39] : memref<16x128xf32, #tpu.memory_space<vmem>>, vector<1x128xf32>
      %145 = vector.shape_cast %144 : vector<1x128xf32> to vector<128xf32>
      %c13 = arith.constant 13 : index
      %c0_40 = arith.constant 0 : index
      %146 = vector.load %arg11[%c13, %c0_40] : memref<32x128xf32, #tpu.memory_space<vmem>>, vector<1x128xf32>
      %147 = vector.shape_cast %146 : vector<1x128xf32> to vector<128xf32>
      %148 = vector.shape_cast %145 : vector<128xf32> to vector<1x128xf32>
      tpu.vector_store %arg11[%c13, %c0_40], %148 {strides = array<i32>} : memref<32x128xf32, #tpu.memory_space<vmem>>, vector<1x128xf32>,
      %c14_i32 = arith.constant 14 : i32
      %149 = arith.addi %6, %c14_i32 : i32
      %150 = arith.index_cast %149 : i32 to index
      %151 = memref.load %arg2[%150] : memref<32xi32, #tpu.memory_space<smem>>
      %152 = arith.index_cast %151 : i32 to index
      %c0_41 = arith.constant 0 : index
      %153 = vector.load %arg10[%152, %c0_41] : memref<16x128xf32, #tpu.memory_space<vmem>>, vector<1x128xf32>
      %154 = vector.shape_cast %153 : vector<1x128xf32> to vector<128xf32>
      %c14 = arith.constant 14 : index
      %c0_42 = arith.constant 0 : index
      %155 = vector.load %arg11[%c14, %c0_42] : memref<32x128xf32, #tpu.memory_space<vmem>>, vector<1x128xf32>
      %156 = vector.shape_cast %155 : vector<1x128xf32> to vector<128xf32>
      %157 = vector.shape_cast %154 : vector<128xf32> to vector<1x128xf32>
      tpu.vector_store %arg11[%c14, %c0_42], %157 {strides = array<i32>} : memref<32x128xf32, #tpu.memory_space<vmem>>, vector<1x128xf32>,
      %c15_i32 = arith.constant 15 : i32
      %158 = arith.addi %6, %c15_i32 : i32
      %159 = arith.index_cast %158 : i32 to index
      %160 = memref.load %arg2[%159] : memref<32xi32, #tpu.memory_space<smem>>
      %161 = arith.index_cast %160 : i32 to index
      %c0_43 = arith.constant 0 : index
      %162 = vector.load %arg10[%161, %c0_43] : memref<16x128xf32, #tpu.memory_space<vmem>>, vector<1x128xf32>
      %163 = vector.shape_cast %162 : vector<1x128xf32> to vector<128xf32>
      %c15 = arith.constant 15 : index
      %c0_44 = arith.constant 0 : index
      %164 = vector.load %arg11[%c15, %c0_44] : memref<32x128xf32, #tpu.memory_space<vmem>>, vector<1x128xf32>
      %165 = vector.shape_cast %164 : vector<1x128xf32> to vector<128xf32>
      %166 = vector.shape_cast %163 : vector<128xf32> to vector<1x128xf32>
      tpu.vector_store %arg11[%c15, %c0_44], %166 {strides = array<i32>} : memref<32x128xf32, #tpu.memory_space<vmem>>, vector<1x128xf32>,
      %c16_i32 = arith.constant 16 : i32
      %167 = arith.addi %6, %c16_i32 : i32
      %168 = arith.index_cast %167 : i32 to index
      %169 = memref.load %arg2[%168] : memref<32xi32, #tpu.memory_space<smem>>
      %170 = arith.index_cast %169 : i32 to index
      %c0_45 = arith.constant 0 : index
      %171 = vector.load %arg10[%170, %c0_45] : memref<16x128xf32, #tpu.memory_space<vmem>>, vector<1x128xf32>
      %172 = vector.shape_cast %171 : vector<1x128xf32> to vector<128xf32>
      %c16 = arith.constant 16 : index
      %c0_46 = arith.constant 0 : index
      %173 = vector.load %arg11[%c16, %c0_46] : memref<32x128xf32, #tpu.memory_space<vmem>>, vector<1x128xf32>
      %174 = vector.shape_cast %173 : vector<1x128xf32> to vector<128xf32>
      %175 = vector.shape_cast %172 : vector<128xf32> to vector<1x128xf32>
      tpu.vector_store %arg11[%c16, %c0_46], %175 {strides = array<i32>} : memref<32x128xf32, #tpu.memory_space<vmem>>, vector<1x128xf32>,
      %c17_i32 = arith.constant 17 : i32
      %176 = arith.addi %6, %c17_i32 : i32
      %177 = arith.index_cast %176 : i32 to index
      %178 = memref.load %arg2[%177] : memref<32xi32, #tpu.memory_space<smem>>
      %179 = arith.index_cast %178 : i32 to index
      %c0_47 = arith.constant 0 : index
      %180 = vector.load %arg10[%179, %c0_47] : memref<16x128xf32, #tpu.memory_space<vmem>>, vector<1x128xf32>
      %181 = vector.shape_cast %180 : vector<1x128xf32> to vector<128xf32>
      %c17 = arith.constant 17 : index
      %c0_48 = arith.constant 0 : index
      %182 = vector.load %arg11[%c17, %c0_48] : memref<32x128xf32, #tpu.memory_space<vmem>>, vector<1x128xf32>
      %183 = vector.shape_cast %182 : vector<1x128xf32> to vector<128xf32>
      %184 = vector.shape_cast %181 : vector<128xf32> to vector<1x128xf32>
      tpu.vector_store %arg11[%c17, %c0_48], %184 {strides = array<i32>} : memref<32x128xf32, #tpu.memory_space<vmem>>, vector<1x128xf32>,
      %c18_i32 = arith.constant 18 : i32
      %185 = arith.addi %6, %c18_i32 : i32
      %186 = arith.index_cast %185 : i32 to index
      %187 = memref.load %arg2[%186] : memref<32xi32, #tpu.memory_space<smem>>
      %188 = arith.index_cast %187 : i32 to index
      %c0_49 = arith.constant 0 : index
      %189 = vector.load %arg10[%188, %c0_49] : memref<16x128xf32, #tpu.memory_space<vmem>>, vector<1x128xf32>
      %190 = vector.shape_cast %189 : vector<1x128xf32> to vector<128xf32>
      %c18 = arith.constant 18 : index
      %c0_50 = arith.constant 0 : index
      %191 = vector.load %arg11[%c18, %c0_50] : memref<32x128xf32, #tpu.memory_space<vmem>>, vector<1x128xf32>
      %192 = vector.shape_cast %191 : vector<1x128xf32> to vector<128xf32>
      %193 = vector.shape_cast %190 : vector<128xf32> to vector<1x128xf32>
      tpu.vector_store %arg11[%c18, %c0_50], %193 {strides = array<i32>} : memref<32x128xf32, #tpu.memory_space<vmem>>, vector<1x128xf32>,
      %c19_i32 = arith.constant 19 : i32
      %194 = arith.addi %6, %c19_i32 : i32
      %195 = arith.index_cast %194 : i32 to index
      %196 = memref.load %arg2[%195] : memref<32xi32, #tpu.memory_space<smem>>
      %197 = arith.index_cast %196 : i32 to index
      %c0_51 = arith.constant 0 : index
      %198 = vector.load %arg10[%197, %c0_51] : memref<16x128xf32, #tpu.memory_space<vmem>>, vector<1x128xf32>
      %199 = vector.shape_cast %198 : vector<1x128xf32> to vector<128xf32>
      %c19 = arith.constant 19 : index
      %c0_52 = arith.constant 0 : index
      %200 = vector.load %arg11[%c19, %c0_52] : memref<32x128xf32, #tpu.memory_space<vmem>>, vector<1x128xf32>
      %201 = vector.shape_cast %200 : vector<1x128xf32> to vector<128xf32>
      %202 = vector.shape_cast %199 : vector<128xf32> to vector<1x128xf32>
      tpu.vector_store %arg11[%c19, %c0_52], %202 {strides = array<i32>} : memref<32x128xf32, #tpu.memory_space<vmem>>, vector<1x128xf32>,
      %c20_i32 = arith.constant 20 : i32
      %203 = arith.addi %6, %c20_i32 : i32
      %204 = arith.index_cast %203 : i32 to index
      %205 = memref.load %arg2[%204] : memref<32xi32, #tpu.memory_space<smem>>
      %206 = arith.index_cast %205 : i32 to index
      %c0_53 = arith.constant 0 : index
      %207 = vector.load %arg10[%206, %c0_53] : memref<16x128xf32, #tpu.memory_space<vmem>>, vector<1x128xf32>
      %208 = vector.shape_cast %207 : vector<1x128xf32> to vector<128xf32>
      %c20 = arith.constant 20 : index
      %c0_54 = arith.constant 0 : index
      %209 = vector.load %arg11[%c20, %c0_54] : memref<32x128xf32, #tpu.memory_space<vmem>>, vector<1x128xf32>
      %210 = vector.shape_cast %209 : vector<1x128xf32> to vector<128xf32>
      %211 = vector.shape_cast %208 : vector<128xf32> to vector<1x128xf32>
      tpu.vector_store %arg11[%c20, %c0_54], %211 {strides = array<i32>} : memref<32x128xf32, #tpu.memory_space<vmem>>, vector<1x128xf32>,
      %c21_i32 = arith.constant 21 : i32
      %212 = arith.addi %6, %c21_i32 : i32
      %213 = arith.index_cast %212 : i32 to index
      %214 = memref.load %arg2[%213] : memref<32xi32, #tpu.memory_space<smem>>
      %215 = arith.index_cast %214 : i32 to index
      %c0_55 = arith.constant 0 : index
      %216 = vector.load %arg10[%215, %c0_55] : memref<16x128xf32, #tpu.memory_space<vmem>>, vector<1x128xf32>
      %217 = vector.shape_cast %216 : vector<1x128xf32> to vector<128xf32>
      %c21 = arith.constant 21 : index
      %c0_56 = arith.constant 0 : index
      %218 = vector.load %arg11[%c21, %c0_56] : memref<32x128xf32, #tpu.memory_space<vmem>>, vector<1x128xf32>
      %219 = vector.shape_cast %218 : vector<1x128xf32> to vector<128xf32>
      %220 = vector.shape_cast %217 : vector<128xf32> to vector<1x128xf32>
      tpu.vector_store %arg11[%c21, %c0_56], %220 {strides = array<i32>} : memref<32x128xf32, #tpu.memory_space<vmem>>, vector<1x128xf32>,
      %c22_i32 = arith.constant 22 : i32
      %221 = arith.addi %6, %c22_i32 : i32
      %222 = arith.index_cast %221 : i32 to index
      %223 = memref.load %arg2[%222] : memref<32xi32, #tpu.memory_space<smem>>
      %224 = arith.index_cast %223 : i32 to index
      %c0_57 = arith.constant 0 : index
      %225 = vector.load %arg10[%224, %c0_57] : memref<16x128xf32, #tpu.memory_space<vmem>>, vector<1x128xf32>
      %226 = vector.shape_cast %225 : vector<1x128xf32> to vector<128xf32>
      %c22 = arith.constant 22 : index
      %c0_58 = arith.constant 0 : index
      %227 = vector.load %arg11[%c22, %c0_58] : memref<32x128xf32, #tpu.memory_space<vmem>>, vector<1x128xf32>
      %228 = vector.shape_cast %227 : vector<1x128xf32> to vector<128xf32>
      %229 = vector.shape_cast %226 : vector<128xf32> to vector<1x128xf32>
      tpu.vector_store %arg11[%c22, %c0_58], %229 {strides = array<i32>} : memref<32x128xf32, #tpu.memory_space<vmem>>, vector<1x128xf32>,
      %c23_i32 = arith.constant 23 : i32
      %230 = arith.addi %6, %c23_i32 : i32
      %231 = arith.index_cast %230 : i32 to index
      %232 = memref.load %arg2[%231] : memref<32xi32, #tpu.memory_space<smem>>
      %233 = arith.index_cast %232 : i32 to index
      %c0_59 = arith.constant 0 : index
      %234 = vector.load %arg10[%233, %c0_59] : memref<16x128xf32, #tpu.memory_space<vmem>>, vector<1x128xf32>
      %235 = vector.shape_cast %234 : vector<1x128xf32> to vector<128xf32>
      %c23 = arith.constant 23 : index
      %c0_60 = arith.constant 0 : index
      %236 = vector.load %arg11[%c23, %c0_60] : memref<32x128xf32, #tpu.memory_space<vmem>>, vector<1x128xf32>
      %237 = vector.shape_cast %236 : vector<1x128xf32> to vector<128xf32>
      %238 = vector.shape_cast %235 : vector<128xf32> to vector<1x128xf32>
      tpu.vector_store %arg11[%c23, %c0_60], %238 {strides = array<i32>} : memref<32x128xf32, #tpu.memory_space<vmem>>, vector<1x128xf32>,
      %c24_i32 = arith.constant 24 : i32
      %239 = arith.addi %6, %c24_i32 : i32
      %240 = arith.index_cast %239 : i32 to index
      %241 = memref.load %arg2[%240] : memref<32xi32, #tpu.memory_space<smem>>
      %242 = arith.index_cast %241 : i32 to index
      %c0_61 = arith.constant 0 : index
      %243 = vector.load %arg10[%242, %c0_61] : memref<16x128xf32, #tpu.memory_space<vmem>>, vector<1x128xf32>
      %244 = vector.shape_cast %243 : vector<1x128xf32> to vector<128xf32>
      %c24 = arith.constant 24 : index
      %c0_62 = arith.constant 0 : index
      %245 = vector.load %arg11[%c24, %c0_62] : memref<32x128xf32, #tpu.memory_space<vmem>>, vector<1x128xf32>
      %246 = vector.shape_cast %245 : vector<1x128xf32> to vector<128xf32>
      %247 = vector.shape_cast %244 : vector<128xf32> to vector<1x128xf32>
      tpu.vector_store %arg11[%c24, %c0_62], %247 {strides = array<i32>} : memref<32x128xf32, #tpu.memory_space<vmem>>, vector<1x128xf32>,
      %c25_i32 = arith.constant 25 : i32
      %248 = arith.addi %6, %c25_i32 : i32
      %249 = arith.index_cast %248 : i32 to index
      %250 = memref.load %arg2[%249] : memref<32xi32, #tpu.memory_space<smem>>
      %251 = arith.index_cast %250 : i32 to index
      %c0_63 = arith.constant 0 : index
      %252 = vector.load %arg10[%251, %c0_63] : memref<16x128xf32, #tpu.memory_space<vmem>>, vector<1x128xf32>
      %253 = vector.shape_cast %252 : vector<1x128xf32> to vector<128xf32>
      %c25 = arith.constant 25 : index
      %c0_64 = arith.constant 0 : index
      %254 = vector.load %arg11[%c25, %c0_64] : memref<32x128xf32, #tpu.memory_space<vmem>>, vector<1x128xf32>
      %255 = vector.shape_cast %254 : vector<1x128xf32> to vector<128xf32>
      %256 = vector.shape_cast %253 : vector<128xf32> to vector<1x128xf32>
      tpu.vector_store %arg11[%c25, %c0_64], %256 {strides = array<i32>} : memref<32x128xf32, #tpu.memory_space<vmem>>, vector<1x128xf32>,
      %c26_i32 = arith.constant 26 : i32
      %257 = arith.addi %6, %c26_i32 : i32
      %258 = arith.index_cast %257 : i32 to index
      %259 = memref.load %arg2[%258] : memref<32xi32, #tpu.memory_space<smem>>
      %260 = arith.index_cast %259 : i32 to index
      %c0_65 = arith.constant 0 : index
      %261 = vector.load %arg10[%260, %c0_65] : memref<16x128xf32, #tpu.memory_space<vmem>>, vector<1x128xf32>
      %262 = vector.shape_cast %261 : vector<1x128xf32> to vector<128xf32>
      %c26 = arith.constant 26 : index
      %c0_66 = arith.constant 0 : index
      %263 = vector.load %arg11[%c26, %c0_66] : memref<32x128xf32, #tpu.memory_space<vmem>>, vector<1x128xf32>
      %264 = vector.shape_cast %263 : vector<1x128xf32> to vector<128xf32>
      %265 = vector.shape_cast %262 : vector<128xf32> to vector<1x128xf32>
      tpu.vector_store %arg11[%c26, %c0_66], %265 {strides = array<i32>} : memref<32x128xf32, #tpu.memory_space<vmem>>, vector<1x128xf32>,
      %c27_i32 = arith.constant 27 : i32
      %266 = arith.addi %6, %c27_i32 : i32
      %267 = arith.index_cast %266 : i32 to index
      %268 = memref.load %arg2[%267] : memref<32xi32, #tpu.memory_space<smem>>
      %269 = arith.index_cast %268 : i32 to index
      %c0_67 = arith.constant 0 : index
      %270 = vector.load %arg10[%269, %c0_67] : memref<16x128xf32, #tpu.memory_space<vmem>>, vector<1x128xf32>
      %271 = vector.shape_cast %270 : vector<1x128xf32> to vector<128xf32>
      %c27 = arith.constant 27 : index
      %c0_68 = arith.constant 0 : index
      %272 = vector.load %arg11[%c27, %c0_68] : memref<32x128xf32, #tpu.memory_space<vmem>>, vector<1x128xf32>
      %273 = vector.shape_cast %272 : vector<1x128xf32> to vector<128xf32>
      %274 = vector.shape_cast %271 : vector<128xf32> to vector<1x128xf32>
      tpu.vector_store %arg11[%c27, %c0_68], %274 {strides = array<i32>} : memref<32x128xf32, #tpu.memory_space<vmem>>, vector<1x128xf32>,
      %c28_i32 = arith.constant 28 : i32
      %275 = arith.addi %6, %c28_i32 : i32
      %276 = arith.index_cast %275 : i32 to index
      %277 = memref.load %arg2[%276] : memref<32xi32, #tpu.memory_space<smem>>
      %278 = arith.index_cast %277 : i32 to index
      %c0_69 = arith.constant 0 : index
      %279 = vector.load %arg10[%278, %c0_69] : memref<16x128xf32, #tpu.memory_space<vmem>>, vector<1x128xf32>
      %280 = vector.shape_cast %279 : vector<1x128xf32> to vector<128xf32>
      %c28 = arith.constant 28 : index
      %c0_70 = arith.constant 0 : index
      %281 = vector.load %arg11[%c28, %c0_70] : memref<32x128xf32, #tpu.memory_space<vmem>>, vector<1x128xf32>
      %282 = vector.shape_cast %281 : vector<1x128xf32> to vector<128xf32>
      %283 = vector.shape_cast %280 : vector<128xf32> to vector<1x128xf32>
      tpu.vector_store %arg11[%c28, %c0_70], %283 {strides = array<i32>} : memref<32x128xf32, #tpu.memory_space<vmem>>, vector<1x128xf32>,
      %c29_i32 = arith.constant 29 : i32
      %284 = arith.addi %6, %c29_i32 : i32
      %285 = arith.index_cast %284 : i32 to index
      %286 = memref.load %arg2[%285] : memref<32xi32, #tpu.memory_space<smem>>
      %287 = arith.index_cast %286 : i32 to index
      %c0_71 = arith.constant 0 : index
      %288 = vector.load %arg10[%287, %c0_71] : memref<16x128xf32, #tpu.memory_space<vmem>>, vector<1x128xf32>
      %289 = vector.shape_cast %288 : vector<1x128xf32> to vector<128xf32>
      %c29 = arith.constant 29 : index
      %c0_72 = arith.constant 0 : index
      %290 = vector.load %arg11[%c29, %c0_72] : memref<32x128xf32, #tpu.memory_space<vmem>>, vector<1x128xf32>
      %291 = vector.shape_cast %290 : vector<1x128xf32> to vector<128xf32>
      %292 = vector.shape_cast %289 : vector<128xf32> to vector<1x128xf32>
      tpu.vector_store %arg11[%c29, %c0_72], %292 {strides = array<i32>} : memref<32x128xf32, #tpu.memory_space<vmem>>, vector<1x128xf32>,
      %c30_i32 = arith.constant 30 : i32
      %293 = arith.addi %6, %c30_i32 : i32
      %294 = arith.index_cast %293 : i32 to index
      %295 = memref.load %arg2[%294] : memref<32xi32, #tpu.memory_space<smem>>
      %296 = arith.index_cast %295 : i32 to index
      %c0_73 = arith.constant 0 : index
      %297 = vector.load %arg10[%296, %c0_73] : memref<16x128xf32, #tpu.memory_space<vmem>>, vector<1x128xf32>
      %298 = vector.shape_cast %297 : vector<1x128xf32> to vector<128xf32>
      %c30 = arith.constant 30 : index
      %c0_74 = arith.constant 0 : index
      %299 = vector.load %arg11[%c30, %c0_74] : memref<32x128xf32, #tpu.memory_space<vmem>>, vector<1x128xf32>
      %300 = vector.shape_cast %299 : vector<1x128xf32> to vector<128xf32>
      %301 = vector.shape_cast %298 : vector<128xf32> to vector<1x128xf32>
      tpu.vector_store %arg11[%c30, %c0_74], %301 {strides = array<i32>} : memref<32x128xf32, #tpu.memory_space<vmem>>, vector<1x128xf32>,
      %c31_i32 = arith.constant 31 : i32
      %302 = arith.addi %6, %c31_i32 : i32
      %303 = arith.index_cast %302 : i32 to index
      %304 = memref.load %arg2[%303] : memref<32xi32, #tpu.memory_space<smem>>
      %305 = arith.index_cast %304 : i32 to index
      %c0_75 = arith.constant 0 : index
      %306 = vector.load %arg10[%305, %c0_75] : memref<16x128xf32, #tpu.memory_space<vmem>>, vector<1x128xf32>
      %307 = vector.shape_cast %306 : vector<1x128xf32> to vector<128xf32>
      %c31 = arith.constant 31 : index
      %c0_76 = arith.constant 0 : index
      %308 = vector.load %arg11[%c31, %c0_76] : memref<32x128xf32, #tpu.memory_space<vmem>>, vector<1x128xf32>
      %309 = vector.shape_cast %308 : vector<1x128xf32> to vector<128xf32>
      %310 = vector.shape_cast %307 : vector<128xf32> to vector<1x128xf32>
      tpu.vector_store %arg11[%c31, %c0_76], %310 {strides = array<i32>} : memref<32x128xf32, #tpu.memory_space<vmem>>, vector<1x128xf32>,
      %c0_77 = arith.constant 0 : index
      %c0_78 = arith.constant 0 : index
      %311 = vector.load %arg4[%c0_77, %c0_78] : memref<32x16xf32, #tpu.memory_space<vmem>>, vector<32x16xf32>
      %c0_79 = arith.constant 0 : index
      %c0_80 = arith.constant 0 : index
      %312 = vector.load %arg6[%c0_79, %c0_80] : memref<16x128xf32, #tpu.memory_space<vmem>>, vector<16x128xf32>
      %cst = arith.constant dense<0.000000e+00> : vector<32x128xf32>
      %313 = tpu.matmul %311, %312, %cst {dimension_numbers = #tpu.dot_dimension_numbers<[1], [0], [0], [1], [0, 0, 1, 1], [], []>} : vector<32x16xf32>, vector<16x128xf32>, vector<32x128xf32> -> vector<32x128xf32>
      %c0_81 = arith.constant 0 : index
      %c0_82 = arith.constant 0 : index
      %314 = vector.load %arg11[%c0_81, %c0_82] : memref<32x128xf32, #tpu.memory_space<vmem>>, vector<32x128xf32>
      %c0_83 = arith.constant 0 : index
      %c0_84 = arith.constant 0 : index
      %315 = vector.load %arg7[%c0_83, %c0_84] : memref<128x128xf32, #tpu.memory_space<vmem>>, vector<128x128xf32>
      %cst_85 = arith.constant dense<0.000000e+00> : vector<32x128xf32>
      %316 = tpu.matmul %314, %315, %cst_85 {dimension_numbers = #tpu.dot_dimension_numbers<[1], [0], [0], [1], [0, 0, 1, 1], [], []>} : vector<32x128xf32>, vector<128x128xf32>, vector<32x128xf32> -> vector<32x128xf32>
      %317 = arith.addf %313, %316 : vector<32x128xf32>
      %c0_86 = arith.constant 0 : index
      %c0_87 = arith.constant 0 : index
      %318 = vector.load %arg8[%c0_86, %c0_87] : memref<1x128xf32, #tpu.memory_space<vmem>>, vector<1x128xf32>
      %319 = vector.broadcast %318 : vector<1x128xf32> to vector<32x128xf32>
      %320 = arith.addf %317, %319 : vector<32x128xf32>
      %321 = arith.index_cast %6 : i32 to index
      %c0_88 = arith.constant 0 : index
      %322 = vector.load %arg13[%321, %c0_88] : memref<32x128xf32, #tpu.memory_space<vmem>>, vector<32x128xf32>
      tpu.vector_store %arg13[%321, %c0_88], %320 {strides = array<i32>} : memref<32x128xf32, #tpu.memory_space<vmem>>, vector<32x128xf32>,
      %c0_89 = arith.constant 0 : index
      %c0_90 = arith.constant 0 : index
      %323 = vector.load %arg12[%c0_89, %c0_90] : memref<4x128xf32, #tpu.memory_space<vmem>>, vector<1x128xf32>
      %cst_91 = arith.constant dense<0.000000e+00> : vector<128xf32>
      %324 = vector.multi_reduction <add>, %320, %cst_91 [0] : vector<32x128xf32> to vector<128xf32>
      %325 = vector.shape_cast %324 : vector<128xf32> to vector<1x128xf32>
      %326 = arith.addf %323, %325 : vector<1x128xf32>
      %c0_92 = arith.constant 0 : index
      %c0_93 = arith.constant 0 : index
      %327 = vector.load %arg12[%c0_92, %c0_93] : memref<4x128xf32, #tpu.memory_space<vmem>>, vector<1x128xf32>
      tpu.vector_store %arg12[%c0_92, %c0_93], %326 {strides = array<i32>} : memref<4x128xf32, #tpu.memory_space<vmem>>, vector<1x128xf32>,
      %c1_94 = arith.constant 1 : index
      %c0_95 = arith.constant 0 : index
      %328 = vector.load %arg12[%c1_94, %c0_95] : memref<4x128xf32, #tpu.memory_space<vmem>>, vector<1x128xf32>
      %329 = arith.mulf %320, %320 : vector<32x128xf32>
      %cst_96 = arith.constant dense<0.000000e+00> : vector<128xf32>
      %330 = vector.multi_reduction <add>, %329, %cst_96 [0] : vector<32x128xf32> to vector<128xf32>
      %331 = vector.shape_cast %330 : vector<128xf32> to vector<1x128xf32>
      %332 = arith.addf %328, %331 : vector<1x128xf32>
      %c1_97 = arith.constant 1 : index
      %c0_98 = arith.constant 0 : index
      %333 = vector.load %arg12[%c1_97, %c0_98] : memref<4x128xf32, #tpu.memory_space<vmem>>, vector<1x128xf32>
      tpu.vector_store %arg12[%c1_97, %c0_98], %332 {strides = array<i32>} : memref<4x128xf32, #tpu.memory_space<vmem>>, vector<1x128xf32>,
    } else {
    }
    %c1_i32 = arith.constant 1 : i32
    %10 = arith.cmpi eq, %arg0, %c1_i32 : i32
    %c0_i32_4 = arith.constant 0 : i32
    %11 = arith.cmpi eq, %arg1, %c0_i32_4 : i32
    %12 = arith.andi %10, %11 : i1
    %13 = arith.extui %12 : i1 to i32
    %c0_i32_5 = arith.constant 0 : i32
    %14 = arith.cmpi ne, %13, %c0_i32_5 : i32
    scf.if %14 {
      %c0 = arith.constant 0 : index
      %c0_11 = arith.constant 0 : index
      %23 = vector.load %arg12[%c0, %c0_11] : memref<4x128xf32, #tpu.memory_space<vmem>>, vector<1x128xf32>
      %24 = vector.shape_cast %23 : vector<1x128xf32> to vector<1x1x128xf32>
      %cst = arith.constant dense<0.000000e+00> : vector<1xf32>
      %25 = vector.multi_reduction <add>, %24, %cst [1, 2] : vector<1x1x128xf32> to vector<1xf32>
      %26 = vector.shape_cast %25 : vector<1xf32> to vector<1x1x1xf32>
      %27 = vector.extract %26[0, 0, 0] : f32 from vector<1x1x1xf32>
      %cst_12 = arith.constant 1.024000e+03 : f32
      %28 = arith.divf %27, %cst_12 : f32
      %c1 = arith.constant 1 : index
      %c0_13 = arith.constant 0 : index
      %29 = vector.load %arg12[%c1, %c0_13] : memref<4x128xf32, #tpu.memory_space<vmem>>, vector<1x128xf32>
      %30 = vector.shape_cast %29 : vector<1x128xf32> to vector<1x1x128xf32>
      %cst_14 = arith.constant dense<0.000000e+00> : vector<1xf32>
      %31 = vector.multi_reduction <add>, %30, %cst_14 [1, 2] : vector<1x1x128xf32> to vector<1xf32>
      %32 = vector.shape_cast %31 : vector<1xf32> to vector<1x1x1xf32>
      %33 = vector.extract %32[0, 0, 0] : f32 from vector<1x1x1xf32>
      %cst_15 = arith.constant 1.024000e+03 : f32
      %34 = arith.divf %33, %cst_15 : f32
      %35 = arith.mulf %28, %28 : f32
      %36 = arith.subf %34, %35 : f32
      %cst_16 = arith.constant 0.000000e+00 : f32
      %37 = arith.maximumf %36, %cst_16 : f32
      %cst_17 = arith.constant 9.99999974E-6 : f32
      %38 = arith.addf %37, %cst_17 : f32
      %39 = math.rsqrt %38 : f32
      %40 = vector.broadcast %28 : f32 to vector<1x128xf32>
      %c2 = arith.constant 2 : index
      %c0_18 = arith.constant 0 : index
      %41 = vector.load %arg12[%c2, %c0_18] : memref<4x128xf32, #tpu.memory_space<vmem>>, vector<1x128xf32>
      tpu.vector_store %arg12[%c2, %c0_18], %40 {strides = array<i32>} : memref<4x128xf32, #tpu.memory_space<vmem>>, vector<1x128xf32>,
      %42 = vector.broadcast %39 : f32 to vector<1x128xf32>
      %c3 = arith.constant 3 : index
      %c0_19 = arith.constant 0 : index
      %43 = vector.load %arg12[%c3, %c0_19] : memref<4x128xf32, #tpu.memory_space<vmem>>, vector<1x128xf32>
      tpu.vector_store %arg12[%c3, %c0_19], %42 {strides = array<i32>} : memref<4x128xf32, #tpu.memory_space<vmem>>, vector<1x128xf32>,
      %cst_20 = arith.constant 0.000000e+00 : f32
      %44 = vector.broadcast %cst_20 : f32 to vector<16x128xf32>
      %c0_21 = arith.constant 0 : index
      %c0_22 = arith.constant 0 : index
      %45 = vector.load %arg9[%c0_21, %c0_22] : memref<16x128xf32, #tpu.memory_space<vmem>>, vector<16x128xf32>
      tpu.vector_store %arg9[%c0_21, %c0_22], %44 {strides = array<i32>} : memref<16x128xf32, #tpu.memory_space<vmem>>, vector<16x128xf32>,
    } else {
    }
    %c1_i32_6 = arith.constant 1 : i32
    %15 = arith.cmpi eq, %arg0, %c1_i32_6 : i32
    %16 = arith.extui %15 : i1 to i32
    %c0_i32_7 = arith.constant 0 : i32
    %17 = arith.cmpi ne, %16, %c0_i32_7 : i32
    scf.if %17 {
      %23 = arith.index_cast %6 : i32 to index
      %c0 = arith.constant 0 : index
      %24 = vector.load %arg13[%23, %c0] : memref<32x128xf32, #tpu.memory_space<vmem>>, vector<32x128xf32>
      %25 = tpu.iota {dimensions = array<i32: 1>} : vector<1x128xi32>
      %c32_i32_11 = arith.constant 32 : i32
      %26 = vector.broadcast %c32_i32_11 : i32 to vector<1x128xi32>
      %27 = arith.cmpi slt, %25, %26 : vector<1x128xi32>
      %28 = arith.extui %27 : vector<1x128xi1> to vector<1x128xi32>
      %29 = arith.sitofp %28 : vector<1x128xi32> to vector<1x128xf32>
      %c32_i32_12 = arith.constant 32 : i32
      %30 = vector.broadcast %c32_i32_12 : i32 to vector<1x128xi32>
      %31 = arith.cmpi eq, %25, %30 : vector<1x128xi32>
      %32 = arith.extui %31 : vector<1x128xi1> to vector<1x128xi32>
      %33 = arith.sitofp %32 : vector<1x128xi32> to vector<1x128xf32>
      %c2 = arith.constant 2 : index
      %c0_13 = arith.constant 0 : index
      %34 = vector.load %arg12[%c2, %c0_13] : memref<4x128xf32, #tpu.memory_space<vmem>>, vector<1x128xf32>
      %35 = vector.broadcast %34 : vector<1x128xf32> to vector<32x128xf32>
      %36 = arith.subf %24, %35 : vector<32x128xf32>
      %c3 = arith.constant 3 : index
      %c0_14 = arith.constant 0 : index
      %37 = vector.load %arg12[%c3, %c0_14] : memref<4x128xf32, #tpu.memory_space<vmem>>, vector<1x128xf32>
      %38 = vector.broadcast %37 : vector<1x128xf32> to vector<32x128xf32>
      %39 = arith.mulf %36, %38 : vector<32x128xf32>
      %cst = arith.constant 5.000000e-01 : f32
      %40 = vector.broadcast %cst : f32 to vector<32x128xf32>
      %41 = arith.mulf %40, %39 : vector<32x128xf32>
      %cst_15 = arith.constant 0.707106769 : f32
      %42 = vector.broadcast %cst_15 : f32 to vector<32x128xf32>
      %43 = arith.mulf %39, %42 : vector<32x128xf32>
      %44 = math.absf %43 : vector<32x128xf32>
      %cst_16 = arith.constant 0.327591091 : f32
      %45 = vector.broadcast %cst_16 : f32 to vector<32x128xf32>
      %46 = arith.mulf %45, %44 : vector<32x128xf32>
      %cst_17 = arith.constant 1.000000e+00 : f32
      %47 = vector.broadcast %cst_17 : f32 to vector<32x128xf32>
      %48 = arith.addf %47, %46 : vector<32x128xf32>
      %cst_18 = arith.constant 1.000000e+00 : f32
      %49 = vector.broadcast %cst_18 : f32 to vector<32x128xf32>
      %50 = arith.divf %49, %48 : vector<32x128xf32>
      %cst_19 = arith.constant 1.06140542 : f32
      %51 = vector.broadcast %cst_19 : f32 to vector<32x128xf32>
      %52 = arith.mulf %51, %50 : vector<32x128xf32>
      %cst_20 = arith.constant -1.45315206 : f32
      %53 = vector.broadcast %cst_20 : f32 to vector<32x128xf32>
      %54 = arith.addf %52, %53 : vector<32x128xf32>
      %55 = arith.mulf %54, %50 : vector<32x128xf32>
      %cst_21 = arith.constant 1.42141378 : f32
      %56 = vector.broadcast %cst_21 : f32 to vector<32x128xf32>
      %57 = arith.addf %55, %56 : vector<32x128xf32>
      %58 = arith.mulf %57, %50 : vector<32x128xf32>
      %cst_22 = arith.constant -0.284496725 : f32
      %59 = vector.broadcast %cst_22 : f32 to vector<32x128xf32>
      %60 = arith.addf %58, %59 : vector<32x128xf32>
      %61 = arith.mulf %60, %50 : vector<32x128xf32>
      %cst_23 = arith.constant 0.254829586 : f32
      %62 = vector.broadcast %cst_23 : f32 to vector<32x128xf32>
      %63 = arith.addf %61, %62 : vector<32x128xf32>
      %64 = arith.mulf %63, %50 : vector<32x128xf32>
      %cst_24 = arith.constant 0.000000e+00 : f32
      %65 = vector.broadcast %cst_24 : f32 to vector<32x128xf32>
      %66 = arith.subf %65, %44 : vector<32x128xf32>
      %67 = arith.mulf %66, %44 : vector<32x128xf32>
      %68 = math.exp %67 : vector<32x128xf32>
      %69 = arith.mulf %64, %68 : vector<32x128xf32>
      %cst_25 = arith.constant 1.000000e+00 : f32
      %70 = vector.broadcast %cst_25 : f32 to vector<32x128xf32>
      %71 = arith.subf %70, %69 : vector<32x128xf32>
      %cst_26 = arith.constant 0.000000e+00 : f32
      %72 = vector.broadcast %cst_26 : f32 to vector<32x128xf32>
      %73 = arith.cmpf oge, %43, %72 : vector<32x128xf32>
      %cst_27 = arith.constant 0.000000e+00 : f32
      %74 = vector.broadcast %cst_27 : f32 to vector<32x128xf32>
      %75 = arith.subf %74, %71 : vector<32x128xf32>
      %76 = arith.select %73, %71, %75 : vector<32x128xi1>, vector<32x128xf32>
      %cst_28 = arith.constant 1.000000e+00 : f32
      %77 = vector.broadcast %cst_28 : f32 to vector<32x128xf32>
      %78 = arith.addf %77, %76 : vector<32x128xf32>
      %79 = arith.mulf %41, %78 : vector<32x128xf32>
      %80 = vector.broadcast %29 : vector<1x128xf32> to vector<32x128xf32>
      %81 = arith.mulf %79, %80 : vector<32x128xf32>
      %82 = vector.broadcast %33 : vector<1x128xf32> to vector<32x128xf32>
      %83 = arith.addf %81, %82 : vector<32x128xf32>
      %84 = tpu.iota {dimensions = array<i32: 0>} : vector<16x32xi32>
      %c0_29 = arith.constant 0 : index
      %c0_30 = arith.constant 0 : index
      %85 = vector.load %arg5[%c0_29, %c0_30] : memref<1x32xi32, #tpu.memory_space<vmem>>, vector<1x32xi32>
      %86 = vector.broadcast %85 : vector<1x32xi32> to vector<16x32xi32>
      %87 = arith.cmpi eq, %84, %86 : vector<16x32xi32>
      %88 = arith.extui %87 : vector<16x32xi1> to vector<16x32xi32>
      %89 = arith.sitofp %88 : vector<16x32xi32> to vector<16x32xf32>
      %c0_31 = arith.constant 0 : index
      %c0_32 = arith.constant 0 : index
      %90 = vector.load %arg9[%c0_31, %c0_32] : memref<16x128xf32, #tpu.memory_space<vmem>>, vector<16x128xf32>
      %cst_33 = arith.constant dense<0.000000e+00> : vector<16x128xf32>
      %91 = tpu.matmul %89, %83, %cst_33 {dimension_numbers = #tpu.dot_dimension_numbers<[1], [0], [0], [1], [0, 0, 1, 1], [], []>} : vector<16x32xf32>, vector<32x128xf32>, vector<16x128xf32> -> vector<16x128xf32>
      %92 = arith.addf %90, %91 : vector<16x128xf32>
      %c0_34 = arith.constant 0 : index
      %c0_35 = arith.constant 0 : index
      %93 = vector.load %arg9[%c0_34, %c0_35] : memref<16x128xf32, #tpu.memory_space<vmem>>, vector<16x128xf32>
      tpu.vector_store %arg9[%c0_34, %c0_35], %92 {strides = array<i32>} : memref<16x128xf32, #tpu.memory_space<vmem>>, vector<16x128xf32>,
    } else {
    }
    %c1_i32_8 = arith.constant 1 : i32
    %18 = arith.cmpi eq, %arg0, %c1_i32_8 : i32
    %c0_i32_9 = arith.constant 0 : i32
    %19 = arith.cmpi eq, %arg1, %c0_i32_9 : i32
    %20 = arith.andi %18, %19 : i1
    %21 = arith.extui %20 : i1 to i32
    %c0_i32_10 = arith.constant 0 : i32
    %22 = arith.cmpi ne, %21, %c0_i32_10 : i32
    scf.if %22 {
      %23 = tpu.iota {dimensions = array<i32: 1>} : vector<1x128xi32>
      %c32_i32_11 = arith.constant 32 : i32
      %24 = vector.broadcast %c32_i32_11 : i32 to vector<1x128xi32>
      %25 = arith.cmpi slt, %23, %24 : vector<1x128xi32>
      %26 = arith.extui %25 : vector<1x128xi1> to vector<1x128xi32>
      %27 = arith.sitofp %26 : vector<1x128xi32> to vector<1x128xf32>
      %c32_i32_12 = arith.constant 32 : i32
      %28 = vector.broadcast %c32_i32_12 : i32 to vector<1x128xi32>
      %29 = arith.cmpi eq, %23, %28 : vector<1x128xi32>
      %30 = arith.extui %29 : vector<1x128xi1> to vector<1x128xi32>
      %31 = arith.sitofp %30 : vector<1x128xi32> to vector<1x128xf32>
      %c0 = arith.constant 0 : index
      %c0_13 = arith.constant 0 : index
      %32 = vector.load %arg9[%c0, %c0_13] : memref<16x128xf32, #tpu.memory_space<vmem>>, vector<16x128xf32>
      %33 = vector.broadcast %31 : vector<1x128xf32> to vector<16x128xf32>
      %34 = arith.mulf %32, %33 : vector<16x128xf32>
      %cst = arith.constant dense<0.000000e+00> : vector<16xf32>
      %35 = vector.multi_reduction <add>, %34, %cst [1] : vector<16x128xf32> to vector<16xf32>
      %36 = vector.shape_cast %35 : vector<16xf32> to vector<16x1xf32>
      %37 = vector.broadcast %27 : vector<1x128xf32> to vector<16x128xf32>
      %38 = arith.mulf %32, %37 : vector<16x128xf32>
      %cst_14 = arith.constant 0.000000e+00 : f32
      %39 = vector.broadcast %cst_14 : f32 to vector<16x1xf32>
      %40 = arith.cmpf ogt, %36, %39 : vector<16x1xf32>
      %cst_15 = arith.constant 1.000000e+00 : f32
      %41 = vector.broadcast %cst_15 : f32 to vector<16x1xf32>
      %42 = arith.maximumf %36, %41 : vector<16x1xf32>
      %43 = vector.broadcast %42 : vector<16x1xf32> to vector<16x128xf32>
      %44 = arith.divf %38, %43 : vector<16x128xf32>
      %cst_16 = arith.constant 0.000000e+00 : f32
      %45 = vector.broadcast %cst_16 : f32 to vector<16x128xf32>
      %46 = vector.shape_cast %40 : vector<16x1xi1> to vector<16x1xi1>
      %47 = vector.broadcast %46 : vector<16x1xi1> to vector<16x128xi1>
      %48 = arith.select %47, %44, %45 : vector<16x128xi1>, vector<16x128xf32>
      %c0_17 = arith.constant 0 : index
      %c0_18 = arith.constant 0 : index
      %49 = vector.load %arg9[%c0_17, %c0_18] : memref<16x128xf32, #tpu.memory_space<vmem>>, vector<16x128xf32>
      tpu.vector_store %arg9[%c0_17, %c0_18], %48 {strides = array<i32>} : memref<16x128xf32, #tpu.memory_space<vmem>>, vector<16x128xf32>,
    } else {
    }
    return
  }
  func.func @transform_1(%arg0: i32, %arg1: i32, %arg2: memref<32xi32, #tpu.memory_space<smem>>) -> (i32, i32) {
    %c0_i32 = arith.constant 0 : i32
    %c0_i32_0 = arith.constant 0 : i32
    return %arg1, %c0_i32 : i32, i32
  }
  func.func @transform_2(%arg0: i32, %arg1: i32, %arg2: memref<32xi32, #tpu.memory_space<smem>>) -> (i32, i32) {
    %c0_i32 = arith.constant 0 : i32
    %c0_i32_0 = arith.constant 0 : i32
    return %c0_i32, %arg1 : i32, i32
  }
  func.func @transform_3(%arg0: i32, %arg1: i32, %arg2: memref<32xi32, #tpu.memory_space<smem>>) -> (i32, i32) {
    %c0_i32 = arith.constant 0 : i32
    %c0_i32_0 = arith.constant 0 : i32
    %c0_i32_1 = arith.constant 0 : i32
    return %c0_i32, %c0_i32_0 : i32, i32
  }
  func.func @transform_4(%arg0: i32, %arg1: i32, %arg2: memref<32xi32, #tpu.memory_space<smem>>) -> (i32, i32) {
    %c0_i32 = arith.constant 0 : i32
    %c0_i32_0 = arith.constant 0 : i32
    %c0_i32_1 = arith.constant 0 : i32
    return %c0_i32, %c0_i32_0 : i32, i32
  }
  func.func @transform_5(%arg0: i32, %arg1: i32, %arg2: memref<32xi32, #tpu.memory_space<smem>>) -> (i32, i32) {
    %c0_i32 = arith.constant 0 : i32
    %c0_i32_0 = arith.constant 0 : i32
    %c0_i32_1 = arith.constant 0 : i32
    return %c0_i32, %c0_i32_0 : i32, i32
  }
  func.func @transform_6(%arg0: i32, %arg1: i32, %arg2: memref<32xi32, #tpu.memory_space<smem>>) -> (i32, i32) {
    %c0_i32 = arith.constant 0 : i32
    %c0_i32_0 = arith.constant 0 : i32
    %c0_i32_1 = arith.constant 0 : i32
    return %c0_i32, %c0_i32_0 : i32, i32
  }
}

</mosaic_0001>

<bundles_post_ra>
// kernel: gcn_layer.2
= control target key start
LH: loop header
LB: loop body
LE: loop exit
PB: predicated region body
PF: predicated region fallthrough
CT: control target
= control target key end

     0   :  { %vm32_vm0 = vcmask 261120   ;;  %v14_v19 = vlaneseq  ;;  %v254_v22 = vmov 0.0   ;;  %s310_s1 = inlined_call_operand.vmem [shape: f32[32,128], index: 1, kind: input, shape index: {}]   ;;  %s311_s0 = inlined_call_operand.vmem [shape: f32[16,32], index: 0, kind: input, shape index: {}]   ;;  %s312_s2 = inlined_call_operand.vmem [shape: f32[1,128], index: 2, kind: input, shape index: {}]   ;;  %s313_s3 = inlined_call_operand.vmem [shape: f32[16,128], index: 3, kind: output, shape index: {}]  }
   0x1   :  { %v24_v0 = vld [vmem:[%s310_s1 + $0x18] sm:$0xff]  ;;  %v23_v1 = vld [vmem:[%s310_s1 + $0x10] sm:$0xff]  ;;  %v19_v2 = vld [vmem:[%s311_s0] sm:$0xff] }
   0x2   :  { %226 = vmatprep.subr.mxu0 %v24_v0  ;;  %v22_v3 = vld [vmem:[%s310_s1 + $0x8] sm:$0xff]  ;;  %234 = vmatprep.mubr.msk.f32.mxu0 %vm32_vm0, %v19_v2  ;;  %v21_v4 = vld [vmem:[%s310_s1] sm:$0xff]  ;;  %v15_v20 = vand.u32 127, %v14_v19 }
   0x3   :  { %227 = vmatpush3.msra.mxu0 %v24_v0  ;;  %v20_v5 = vld [vmem:[%s311_s0 + $0x8] sm:$0xff]  ;;  %v217_v7 = vld [vmem:[%s312_s2] ss:$0 sm:$0xff] }
   0x4   :  { %228 = vmatprep.subr.mxu0 %v23_v1  ;;  %vm16_vm1 = vcmp.lt.s32.totalorder %v15_v20, 32 }
   0x5   :  { %229 = vmatpush3.msra.mxu0 %v23_v1  ;;  %v298_v23 = vsel %vm16_vm1, 1.0, %v254_v22 }
   0x6   :  { %230 = vmatprep.subr.mxu0 %v22_v3 }
   0x7   :  { %231 = vmatpush3.msra.mxu0 %v22_v3 }
   0x8   :  { %232 = vmatprep.subr.mxu0 %v21_v4 }
   0x9   :  { %233 = vmatpush3.msra.mxu0 %v21_v4 }
   0xa   :  { %235 = vmatmul.mubr.msk.f32.vlgmr.msra.gmra.mxu0 %vm32_vm0, %v20_v5 }
  0xca   :  { %v236_v6 = vpop.f32.mrf.mxu0 }
  0xcb   :  { %v111_v9 = vadd.f32 %v236_v6, %v217_v7 }
  0xcc   :  { %v105_v8 = vpop.f32.mrf.mxu0 }
  0xcd   :  { %v106_v10 = vadd.f32 %v217_v7, %v105_v8 }
  0xcf   :  { %v114_v11 = vadd.f32 %v111_v9, %v106_v10 }
  0xd1   :  { %115 = vadd.xlane.f32.xlu0 %v114_v11 }
 0x15a   :  { %v116_v12 = vpop.xlane.xlu0 %115 }
 0x15b   :  { %v117_v13 = vrot.slane %v116_v12, 4 }
 0x15d   :  { %v118_v14 = vadd.f32 %v117_v13, %v116_v12 }
 0x15f   :  { %v119_v15 = vrot.slane %v118_v14, 2 }
 0x161   :  { %v120_v16 = vadd.f32 %v119_v15, %v118_v14 }
 0x163   :  { %v121_v17 = vrot.slane %v120_v16, 1 }
 0x165   :  { %v122_v18 = vadd.f32 %v121_v17, %v120_v16 }
 0x167   :  { %237 = vpush %v122_v18 }
 0x198   :  { %s238_s0 = spop %237 }
 0x199   :  { %s126_s1 = smul.f32 0.001953125, %s238_s0 }
 0x19b   :  { %v127_v21 = vstv %s126_s1 }
 0x19c   :  { %v128_v24 = vsub.f32 %v106_v10, %v127_v21  ;;  %v129_v25 = vsub.f32 %v111_v9, %v127_v21 }
 0x19e   :  { %v130_v26 = vmul.f32 %v298_v23, %v128_v24  ;;  %v131_v27 = vmul.f32 %v298_v23, %v129_v25 }
 0x1a0   :  { %v132_v28 = vmul.f32 %v130_v26, %v130_v26  ;;  %v133_v29 = vmul.f32 %v131_v27, %v131_v27 }
 0x1a2   :  { %v134_v30 = vadd.f32 %v133_v29, %v132_v28 }
 0x1a4   :  { %135 = vadd.xlane.f32.xlu0 %v134_v30 }
 0x22d   :  { %v136_v31 = vpop.xlane.xlu0 %135 }
 0x22e   :  { %v137_v32 = vrot.slane %v136_v31, 4 }
 0x230   :  { %v138_v33 = vadd.f32 %v137_v32, %v136_v31 }
 0x232   :  { %v139_v34 = vrot.slane %v138_v33, 2 }
 0x234   :  { %v140_v35 = vadd.f32 %v139_v34, %v138_v33 }
 0x236   :  { %v141_v36 = vrot.slane %v140_v35, 1 }
 0x238   :  { %v142_v37 = vadd.f32 %v141_v36, %v140_v35 }
 0x23a   :  { %239 = vpush %v142_v37 }
 0x26b   :  { %s240_s2 = spop %239 }
 0x26c   :  { %s146_s26 = smul.f32 0.001953125, %s240_s2 }
 0x26e   :  { %s147_s27 = sadd.f32 1e-05, %s146_s26 }
 0x270   :  { %v148_v38 = vstv %s147_s27 }
 0x271   :  { %244 = vrsqrt.f32 %v148_v38 }
 0x27e   :  { %v245_v39 = vpop.eup %244 }
 0x27f   :  { %241 = vpush %v245_v39 }
 0x2b0   :  { %s242_s28 = spop %241 }
 0x2b1   :  { %v151_v40 = vstv %s242_s28 }
 0x2b2   :  { %v152_v41 = vmul.f32 %v151_v40, %v128_v24  ;;  %v153_v42 = vmul.f32 %v151_v40, %v129_v25 }
 0x2b4   :  { %v156_v43 = vmul.f32 0.70710677, %v152_v41  ;;  %v157_v44 = vmul.f32 0.70710677, %v153_v42  ;;  %v154_v22 = vmul.f32 0.5, %v152_v41  ;;  %v155_v26 = vmul.f32 0.5, %v153_v42 }
 0x2b6   :  { %v158_v45 = vand.u32 2147483647, %v156_v43  ;;  %v159_v46 = vand.u32 2147483647, %v157_v44  ;;  %vm198_vm2 = vcmp.ge.f32.partialorder %v156_v43, 0.0  ;;  %vm199_vm3 = vcmp.ge.f32.partialorder %v157_v44, 0.0 }
 0x2b8   :  { %v160_v47 = vmul.f32 0.3275911, %v158_v45  ;;  %v161_v48 = vmul.f32 0.3275911, %v159_v46  ;;  %v186_v51 = vsub.f32 0.0, %v158_v45  ;;  %v187_v52 = vsub.f32 0.0, %v159_v46 }
 0x2ba   :  { %v162_v49 = vadd.f32 1.0, %v160_v47  ;;  %v163_v50 = vadd.f32 1.0, %v161_v48  ;;  %v188_v53 = vmul.f32 %v186_v51, %v158_v45  ;;  %v189_v54 = vmul.f32 %v187_v52, %v159_v46 }
 0x2bc   :  { %246 = vrcp.f32 %v162_v49  ;;  %v190_v58 = vmul.f32 1.442695, %v188_v53  ;;  %v192_v60 = vmul.f32 1.442695, %v189_v54 }
 0x2bd   :  { %248 = vrcp.f32 %v163_v50 }
 0x2be   :  { %250 = vpow2.f32 %v190_v58 }
 0x2bf   :  { %252 = vpow2.f32 %v192_v60 }
 0x2c9   :  { %v247_v55 = vpop.eup %246 }
 0x2ca   :  { %v249_v56 = vpop.eup %248  ;;  %v168_v57 = vmul.f32 1.0614054, %v247_v55 }
 0x2cb   :  { %v169_v59 = vmul.f32 1.0614054, %v249_v56  ;;  %v251_v12 = vpop.eup %250 }
 0x2cc   :  { %v170_v61 = vadd.f32 -1.4531521, %v168_v57  ;;  %v253_v14 = vpop.eup %252 }
 0x2cd   :  { %v171_v62 = vadd.f32 -1.4531521, %v169_v59 }
 0x2ce   :  { %v172_v63 = vmul.f32 %v247_v55, %v170_v61 }
 0x2cf   :  { %v173_v0 = vmul.f32 %v249_v56, %v171_v62 }
 0x2d0   :  { %v174_v1 = vadd.f32 1.4214138, %v172_v63 }
 0x2d1   :  { %v175_v2 = vadd.f32 1.4214138, %v173_v0 }
 0x2d2   :  { %v176_v3 = vmul.f32 %v247_v55, %v174_v1 }
 0x2d3   :  { %v177_v4 = vmul.f32 %v249_v56, %v175_v2 }
 0x2d4   :  { %v178_v5 = vadd.f32 -0.28449672, %v176_v3 }
 0x2d5   :  { %v179_v6 = vadd.f32 -0.28449672, %v177_v4 }
 0x2d6   :  { %v180_v7 = vmul.f32 %v247_v55, %v178_v5 }
 0x2d7   :  { %v181_v8 = vmul.f32 %v249_v56, %v179_v6 }
 0x2d8   :  { %v182_v9 = vadd.f32 0.2548296, %v180_v7 }
 0x2d9   :  { %v183_v10 = vadd.f32 0.2548296, %v181_v8 }
 0x2da   :  { %v184_v11 = vmul.f32 %v247_v55, %v182_v9 }
 0x2db   :  { %v185_v13 = vmul.f32 %v249_v56, %v183_v10 }
 0x2dc   :  { %v194_v15 = vmul.f32 %v251_v12, %v184_v11 }
 0x2dd   :  { %v195_v16 = vmul.f32 %v253_v14, %v185_v13 }
 0x2de   :  { %v196_v17 = vsub.f32 1.0, %v194_v15 }
 0x2df   :  { %v197_v18 = vsub.f32 1.0, %v195_v16 }
 0x2e0   :  { %v200_v19 = vsub.f32 0.0, %v196_v17 }
 0x2e1   :  { %v201_v20 = vsub.f32 0.0, %v197_v18 }
 0x2e2   :  { %v202_v21 = vsel %vm198_vm2, %v196_v17, %v200_v19 }
 0x2e3   :  { %v203_v24 = vsel %vm199_vm3, %v197_v18, %v201_v20  ;;  %v204_v25 = vadd.f32 1.0, %v202_v21 }
 0x2e4   :  { %v205_v27 = vadd.f32 1.0, %v203_v24 }
 0x2e5   :  { %v206_v28 = vmul.f32 %v204_v25, %v154_v22 }
 0x2e6   :  { %v207_v29 = vmul.f32 %v205_v27, %v155_v26 }
 0x2e7   :  { %v208_v30 = vmul.f32 %v298_v23, %v206_v28 }
 0x2e8   :  { %v209_v31 = vmul.f32 %v298_v23, %v207_v29 }
 0x2e9   :  { %210 = vst [vmem:[%s313_s3] sm:$0xff] %v208_v30 }
 0x2ea   :  { %211 = vst [vmem:[%s313_s3 + $0x8] sm:$0xff] %v209_v31 }

// kernel: gcn_layer.3
= control target key start
LH: loop header
LB: loop body
LE: loop exit
PB: predicated region body
PF: predicated region fallthrough
CT: control target
= control target key end

     0   :  { %s1785_s0 = inlined_call_operand.vmem [shape: s32[32], index: 0, kind: input, shape index: {}]   ;;  %s1786_s1 = inlined_call_operand.vmem [shape: f32[16,128], index: 1, kind: input, shape index: {}]   ;;  %s1787_s2 = inlined_call_operand.vmem [shape: f32[32,16], index: 2, kind: input, shape index: {}]   ;;  %s1788_s3 = inlined_call_operand.vmem [shape: s32[1,32], index: 3, kind: input, shape index: {}]   ;;  %s1789_s4 = inlined_call_operand.vmem [shape: f32[16,128], index: 4, kind: input, shape index: {}]   ;;  %s1790_s5 = inlined_call_operand.vmem [shape: f32[128,128], index: 5, kind: input, shape index: {}]   ;;  %s1791_s6 = inlined_call_operand.vmem [shape: f32[1,128], index: 6, kind: input, shape index: {}]   ;;  %s1792_s7 = inlined_call_operand.hbm [shape: f32[16,128], index: 7, kind: output, shape index: {}]  }
   0x1   :  { %s12_s26 = sshll.u32 %s1785_s0, 4  ;;  %s13_s26 = int_to_ptr.vmem [resolvable:$true] %s12_s26 }
   0x2   :  { %s1396_s27 = scalar_lea.vmem %s13_s26, 16  ;;  %p1401_p1 = scmp.lt.s32.totalorder %s13_s26, %s13_s26 }
   0x3   :  { %p1397_p0 = scmp.ne.s32.totalorder %s13_s26, %s1396_s27  ;;  %p1402_p2 = scmp.lt.s32.totalorder %s1396_s27, %s1396_s27 }
   0x5   :  { %p1403_p3 = por %p1402_p2, %p1401_p1 }
   0x7   :  { %p1404_p4 = pnand %p1403_p3, %p1397_p0 }
   0x9   :  { %1407 = shalt.err (!%p1404_p4)  }
   0xa   :  { %s1464_s28 = smov [#allocation8]  }
   0xb   :  { %15 = dma.vmem_to_smem %s13_s26, 16, %s1464_s28, [#allocation7] }
   0xc   :  { %1444 = dma.done.wait [#allocation7], 16 }
   0xd   :  { %1445 = vsyncadd [#allocation7], 4294967280 }
   0xe   :  { %17 = sfence }
   0xf   :  { %18 = vsyncpa [#allocation10], 0  ;;  %s1516_s29 = smov 0   ;;  %s1518_s30 = smov 0  }
  0x10   :  { %s1520_s8 = smov 0  }
  0x11 LB: > { %s1175_s0 = sadd.s32 4294967295, %s1462_s8   ;;  %s36_s9 = sadd.s32 1, %s1458_s30  ;;  %s1462_s8 = sphi %s1520_s8, %s24_s8   ;;  %s1458_s30 = sphi %s1518_s30, %s1795_s30   ;;  %s1454_s29 = sphi %s1516_s29, %s1794_s29  }
  0x12   : > { %p38_p5 = scmp.ge.s32.totalorder %s36_s9, 2  ;;  %p1179_p6 = scmp.ge.s32.totalorder %s1462_s8, 1 }
  0x13   : > { %p212_p7 = scmp.lt.s32.totalorder %s1462_s8, 3 }
  0x14   : > { %s1797_s9 = smov (%p38_p5, %s36_s9), 0 }
  0x15   : > { %p213_p8 = pnand %p1179_p6, %p212_p7 }
  0x16   : > { %p247_p9 = scmp.eq.s32.totalorder (!%p213_p8), %s1454_s29, 0 }
  0x17   : > { %216 = sbr.rel (%p213_p8) target bundleno = 1056 (0x420), region = 40 }
  0x1c   : > { %252 = sbr.rel (!%p247_p9) target bundleno = 37 (0x25), region = 44  ;;  %v286_v0 = vld [vmem:[%s1786_s1] sm:$0xff] (%p247_p9)  ;;  %v288_v1 = vld [vmem:[%s1786_s1 + $0x8] sm:$0xff] (%p247_p9) }
  0x1d   : > { %287 = vst [vmem:[#allocation2] sm:$0xff] (%p247_p9), %v286_v0  ;;  %289 = vst [vmem:[#allocation2 + $0x8] sm:$0xff] (%p247_p9), %v288_v1 }
  0x21   : > { %297 = vsyncadd [#allocation6], 256 }
  0x22   : > { %1446 = dma.done.wait [#allocation6], 256 }
  0x23   : > { %1447 = vsyncadd [#allocation6], 4294967040  ;;  %v1465_v2 = vmov 0.0  }
  0x24   : > { %301 = vst [vmem:[#allocation4] sm:$0xf] %v1465_v2 }
  0x25 PF: > { %p1181_p10 = scmp.ne.s32.totalorder %s1454_s29, 0 }
  0x26   : > { %s306_s18 = sld [smem:[#allocation8]] (!%p1181_p10) }
  0x27   : > { %305 = sbr.rel (%p1181_p10) target bundleno = 312 (0x138), region = 82  ;;  %s1551_s19 = sld [smem:[#allocation8 + $0x1]] (!%p1181_p10) }
  0x28   : > { %s1556_s22 = sld [smem:[#allocation8 + $0x2]] (!%p1181_p10) }
  0x29   : > { %s1558_s23 = sld [smem:[#allocation8 + $0x3]] (!%p1181_p10) }
  0x2a   : > { %s1566_s28 = sld [smem:[#allocation8 + $0x4]] (!%p1181_p10) }
  0x2b   : > { %s1571_s12 = sld [smem:[#allocation8 + $0x5]] (!%p1181_p10) }
  0x2c   : > { %v490_v3 = vld [vmem:[%s1790_s5 + $0x78] sm:$0xff]  ;;  %v489_v4 = vld [vmem:[%s1790_s5 + $0x70] sm:$0xff]  ;;  %v488_v5 = vld [vmem:[%s1790_s5 + $0x68] sm:$0xff]  ;;  %vm576_vm0 = vcmask 130048   ;;  %s1582_s21 = sld [smem:[#allocation8 + $0x6]]  ;;  %s307_s26 = scalar_lea.vmem [#allocation2], %s306_s18 }
  0x2d   : > { %1270 = vmatprep.subr.mxu0 %v490_v3  ;;  %v487_v6 = vld [vmem:[%s1790_s5 + $0x60] sm:$0xff]  ;;  %v470_v7 = vld [vmem:[%s1789_s4 + $0x8] sm:$0xff]  ;;  %v486_v9 = vld [vmem:[%s1790_s5 + $0x58] sm:$0xff]  ;;  %s1587_s27 = sld [smem:[#allocation8 + $0x7]]  ;;  %s312_s10 = scalar_lea.vmem [#allocation2], %s1551_s19 }
  0x2e   : > { %1271 = vmatpush3.msra.mxu0 %v490_v3  ;;  %1308 = vmatprep.subr.mxu1 %v470_v7  ;;  %v469_v8 = vld [vmem:[%s1789_s4] sm:$0xff]  ;;  %v485_v10 = vld [vmem:[%s1790_s5 + $0x50] sm:$0xff]  ;;  %v466_v12 = vld [vmem:[%s1787_s2 + $0x8] sm:$0xff]  ;;  %s1590_s11 = sld [smem:[#allocation8 + $0x8]]  ;;  %s317_s18 = scalar_lea.vmem [#allocation2], %s1556_s22 }
  0x2f   : > { %1272 = vmatprep.subr.mxu0 %v489_v4  ;;  %1309 = vmatpush3.msra.mxu1 %v470_v7  ;;  %v465_v11 = vld [vmem:[%s1787_s2] sm:$0xff]  ;;  %v467_v15 = vld [vmem:[%s1787_s2 + $0x10] sm:$0xff]  ;;  %s1597_s15 = sld [smem:[#allocation8 + $0x9]]  ;;  %v484_v17 = vld [vmem:[%s1790_s5 + $0x48] sm:$0xff]  ;;  %s322_s19 = scalar_lea.vmem [#allocation2], %s1558_s23 }
  0x30   : > { %1273 = vmatpush3.msra.mxu0 %v489_v4  ;;  %1310 = vmatprep.subr.mxu1 %v469_v8  ;;  %v308_v13 = vld [vmem:[%s307_s26] sm:$0x1]  ;;  %s1604_s20 = sld [smem:[#allocation8 + $0xa]]  ;;  %s327_s22 = scalar_lea.vmem [#allocation2], %s1566_s28  ;;  %v468_v20 = vld [vmem:[%s1787_s2 + $0x18] sm:$0xff]  ;;  %v481_v27 = vld [vmem:[%s1790_s5 + $0x30] sm:$0xff] }
  0x31   : > { %1274 = vmatprep.subr.mxu0 %v488_v5  ;;  %1311 = vmatpush3.msra.mxu1 %v469_v8  ;;  %309 = vst [vmem:[#allocation3] sm:$0x1] %v308_v13  ;;  %v313_v14 = vld [vmem:[%s312_s10] sm:$0x1]  ;;  %s1607_s24 = sld [smem:[#allocation8 + $0xb]]  ;;  %s332_s13 = scalar_lea.vmem [#allocation2], %s1571_s12 }
  0x32   : > { %1275 = vmatpush3.msra.mxu0 %v488_v5  ;;  %1312 = vmatprep.mubr.msk.f32.mxu1 %vm576_vm0, %v465_v11  ;;  %314 = vst [vmem:[#allocation3 + $0x1] sm:$0x1] %v313_v14  ;;  %v318_v16 = vld [vmem:[%s317_s18] sm:$0x1]  ;;  %s1617_s28 = sld [smem:[#allocation8 + $0xc]]  ;;  %s337_s14 = scalar_lea.vmem [#allocation2], %s1582_s21 }
  0x33   : > { %1276 = vmatprep.subr.mxu0 %v487_v6  ;;  %1313 = vmatmul.mubr.msk.f32.vlgmr.msra.gmra.mxu1 %vm576_vm0, %v466_v12  ;;  %319 = vst [vmem:[#allocation3 + $0x2] sm:$0x1] %v318_v16  ;;  %v323_v18 = vld [vmem:[%s322_s19] sm:$0x1]  ;;  %s1620_s18 = sld [smem:[#allocation8 + $0xd]]  ;;  %v482_v24 = vld [vmem:[%s1790_s5 + $0x38] sm:$0xff] }
  0x34   : > { %1277 = vmatpush3.msra.mxu0 %v487_v6  ;;  %324 = vst [vmem:[#allocation3 + $0x3] sm:$0x1] %v323_v18  ;;  %v328_v19 = vld [vmem:[%s327_s22] sm:$0x1]  ;;  %1315 = vmatprep.mubr.msk.f32.mxu1 %vm576_vm0, %v467_v15  ;;  %s342_s19 = scalar_lea.vmem [#allocation2], %s1587_s27  ;;  %s1626_s12 = sld [smem:[#allocation8 + $0xe]] }
  0x35   : > { %1278 = vmatprep.subr.mxu0 %v486_v9  ;;  %v483_v21 = vld [vmem:[%s1790_s5 + $0x40] sm:$0xff]  ;;  %329 = vst [vmem:[#allocation3 + $0x4] sm:$0x1] %v328_v19  ;;  %s347_s21 = scalar_lea.vmem [#allocation2], %s1590_s11  ;;  %s1630_s22 = sld [smem:[#allocation8 + $0xf]]  ;;  %v480_v30 = vld [vmem:[%s1790_s5 + $0x28] sm:$0xff] }
  0x36   : > { %1279 = vmatpush3.msra.mxu0 %v486_v9  ;;  %v333_v22 = vld [vmem:[%s332_s13] sm:$0x1]  ;;  %s352_s27 = scalar_lea.vmem [#allocation2], %s1597_s15  ;;  %s1636_s10 = sld [smem:[#allocation8 + $0x10]]  ;;  %v478_v35 = vld [vmem:[%s1790_s5 + $0x18] sm:$0xff]  ;;  %v477_v40 = vld [vmem:[%s1790_s5 + $0x10] sm:$0xff] }
  0x37   : > { %1280 = vmatprep.subr.mxu0 %v485_v10  ;;  %334 = vst [vmem:[#allocation3 + $0x5] sm:$0x1] %v333_v22  ;;  %v338_v23 = vld [vmem:[%s337_s14] sm:$0x1]  ;;  %1316 = vmatmul.mubr.msk.f32.gmra.mxu1 %vm576_vm0, %v468_v20  ;;  %s357_s23 = scalar_lea.vmem [#allocation2], %s1604_s20  ;;  %s1639_s11 = sld [smem:[#allocation8 + $0x11]] }
  0x38   : > { %1281 = vmatpush3.msra.mxu0 %v485_v10  ;;  %339 = vst [vmem:[#allocation3 + $0x6] sm:$0x1] %v338_v23  ;;  %v343_v25 = vld [vmem:[%s342_s19] sm:$0x1]  ;;  %s362_s16 = scalar_lea.vmem [#allocation2], %s1607_s24  ;;  %s1645_s15 = sld [smem:[#allocation8 + $0x12]] }
  0x39   : > { %1282 = vmatprep.subr.mxu0 %v484_v17  ;;  %344 = vst [vmem:[#allocation3 + $0x7] sm:$0x1] %v343_v25  ;;  %v348_v26 = vld [vmem:[%s347_s21] sm:$0x1]  ;;  %s367_s17 = scalar_lea.vmem [#allocation2], %s1617_s28  ;;  %s1648_s20 = sld [smem:[#allocation8 + $0x13]] }
  0x3a   : > { %1283 = vmatpush3.msra.mxu0 %v484_v17  ;;  %349 = vst [vmem:[#allocation3 + $0x8] sm:$0x1] %v348_v26  ;;  %v353_v28 = vld [vmem:[%s352_s27] sm:$0x1]  ;;  %s372_s25 = scalar_lea.vmem [#allocation2], %s1620_s18  ;;  %s1654_s24 = sld [smem:[#allocation8 + $0x14]] }
  0x3b   : > { %1284 = vmatprep.subr.mxu0 %v483_v21  ;;  %354 = vst [vmem:[#allocation3 + $0x9] sm:$0x1] %v353_v28  ;;  %v358_v29 = vld [vmem:[%s357_s23] sm:$0x1]  ;;  %s377_s28 = scalar_lea.vmem [#allocation2], %s1626_s12  ;;  %s1660_s23 = sld [smem:[#allocation8 + $0x15]] }
  0x3c   : > { %1285 = vmatpush3.msra.mxu0 %v483_v21  ;;  %359 = vst [vmem:[#allocation3 + $0xa] sm:$0x1] %v358_v29  ;;  %v363_v31 = vld [vmem:[%s362_s16] sm:$0x1]  ;;  %s382_s13 = scalar_lea.vmem [#allocation2], %s1630_s22  ;;  %s1663_s18 = sld [smem:[#allocation8 + $0x16]] }
  0x3d   : > { %1286 = vmatprep.subr.mxu0 %v482_v24  ;;  %364 = vst [vmem:[#allocation3 + $0xb] sm:$0x1] %v363_v31  ;;  %v368_v32 = vld [vmem:[%s367_s17] sm:$0x1]  ;;  %s387_s14 = scalar_lea.vmem [#allocation2], %s1636_s10  ;;  %s1666_s16 = sld [smem:[#allocation8 + $0x17]] }
  0x3e   : > { %1287 = vmatpush3.msra.mxu0 %v482_v24  ;;  %v479_v33 = vld [vmem:[%s1790_s5 + $0x20] sm:$0xff]  ;;  %369 = vst [vmem:[#allocation3 + $0xc] sm:$0x1] %v368_v32  ;;  %s392_s19 = scalar_lea.vmem [#allocation2], %s1639_s11  ;;  %s1672_s22 = sld [smem:[#allocation8 + $0x18]]  ;;  %v476_v43 = vld [vmem:[%s1790_s5 + $0x8] sm:$0xff] }
  0x3f   : > { %1288 = vmatprep.subr.mxu0 %v481_v27  ;;  %v373_v34 = vld [vmem:[%s372_s25] sm:$0x1]  ;;  %s397_s21 = scalar_lea.vmem [#allocation2], %s1645_s15  ;;  %s1675_s10 = sld [smem:[#allocation8 + $0x19]] }
  0x40   : > { %1289 = vmatpush3.msra.mxu0 %v481_v27  ;;  %374 = vst [vmem:[#allocation3 + $0xd] sm:$0x1] %v373_v34  ;;  %v378_v36 = vld [vmem:[%s377_s28] sm:$0x1]  ;;  %v471_v37 = vld [vmem:[#allocation3] sm:$0xff]  ;;  %s402_s27 = scalar_lea.vmem [#allocation2], %s1648_s20 }
  0x41   : > { %1290 = vmatprep.subr.mxu0 %v480_v30  ;;  %379 = vst [vmem:[#allocation3 + $0xe] sm:$0x1] %v378_v36  ;;  %v383_v38 = vld [vmem:[%s382_s13] sm:$0x1]  ;;  %1302 = vmatprep.mubr.f32.mxu0 %v471_v37  ;;  %s1681_s11 = sld [smem:[#allocation8 + $0x1a]]  ;;  %s407_s28 = scalar_lea.vmem [#allocation2], %s1654_s24 }
  0x42   : > { %1291 = vmatpush3.msra.mxu0 %v480_v30  ;;  %384 = vst [vmem:[#allocation3 + $0xf] sm:$0x1] %v383_v38  ;;  %v388_v39 = vld [vmem:[%s387_s14] sm:$0x1]  ;;  %s1684_s15 = sld [smem:[#allocation8 + $0x1b]]  ;;  %s412_s12 = scalar_lea.vmem [#allocation2], %s1660_s23 }
  0x43   : > { %1292 = vmatprep.subr.mxu0 %v479_v33  ;;  %389 = vst [vmem:[#allocation3 + $0x10] sm:$0x1] %v388_v39  ;;  %v393_v41 = vld [vmem:[%s392_s19] sm:$0x1]  ;;  %s1690_s20 = sld [smem:[#allocation8 + $0x1c]]  ;;  %s417_s17 = scalar_lea.vmem [#allocation2], %s1663_s18 }
  0x44   : > { %1293 = vmatpush3.msra.mxu0 %v479_v33  ;;  %394 = vst [vmem:[#allocation3 + $0x11] sm:$0x1] %v393_v41  ;;  %v398_v42 = vld [vmem:[%s397_s21] sm:$0x1]  ;;  %s1210_s24 = sld [smem:[#allocation8 + $0x1d]]  ;;  %s422_s19 = scalar_lea.vmem [#allocation2], %s1666_s16 }
  0x45   : > { %1294 = vmatprep.subr.mxu0 %v478_v35  ;;  %399 = vst [vmem:[#allocation3 + $0x12] sm:$0x1] %v398_v42  ;;  %v403_v44 = vld [vmem:[%s402_s27] sm:$0x1]  ;;  %s1211_s21 = sld [smem:[#allocation8 + $0x1e]]  ;;  %s427_s23 = scalar_lea.vmem [#allocation2], %s1672_s22 }
  0x46   : > { %1295 = vmatpush3.msra.mxu0 %v478_v35  ;;  %404 = vst [vmem:[#allocation3 + $0x13] sm:$0x1] %v403_v44  ;;  %v408_v45 = vld [vmem:[%s407_s28] sm:$0x1]  ;;  %s1212_s25 = sld [smem:[#allocation8 + $0x1f]]  ;;  %s432_s18 = scalar_lea.vmem [#allocation2], %s1675_s10 }
  0x47   : > { %1296 = vmatprep.subr.mxu0 %v477_v40  ;;  %v475_v46 = vld [vmem:[%s1790_s5] sm:$0xff]  ;;  %409 = vst [vmem:[#allocation3 + $0x14] sm:$0x1] %v408_v45  ;;  %s437_s26 = scalar_lea.vmem [#allocation2], %s1681_s11  ;;  %v690_v33 = vld [vmem:[#allocation4] sm:$0x1] }
  0x48   : > { %1297 = vmatpush3.msra.mxu0 %v477_v40  ;;  %v413_v47 = vld [vmem:[%s412_s12] sm:$0x1]  ;;  %s442_s27 = scalar_lea.vmem [#allocation2], %s1684_s15  ;;  %v702_v36 = vld [vmem:[#allocation4 + $0x1] sm:$0x1] }
  0x49   : > { %1298 = vmatprep.subr.mxu0 %v476_v43  ;;  %414 = vst [vmem:[#allocation3 + $0x15] sm:$0x1] %v413_v47  ;;  %v418_v48 = vld [vmem:[%s417_s17] sm:$0x1]  ;;  %v472_v49 = vld [vmem:[#allocation3 + $0x8] sm:$0xff]  ;;  %s447_s16 = scalar_lea.vmem [#allocation2], %s1690_s20 }
  0x4a   : > { %1299 = vmatpush3.msra.mxu0 %v476_v43  ;;  %419 = vst [vmem:[#allocation3 + $0x16] sm:$0x1] %v418_v48  ;;  %v423_v50 = vld [vmem:[%s422_s19] sm:$0x1]  ;;  %s452_s28 = scalar_lea.vmem [#allocation2], %s1210_s24 }
  0x4b   : > { %1300 = vmatprep.subr.mxu0 %v475_v46  ;;  %424 = vst [vmem:[#allocation3 + $0x17] sm:$0x1] %v423_v50  ;;  %v428_v51 = vld [vmem:[%s427_s23] sm:$0x1]  ;;  %s457_s22 = scalar_lea.vmem [#allocation2], %s1211_s21 }
  0x4c   : > { %1301 = vmatpush3.msra.mxu0 %v475_v46  ;;  %429 = vst [vmem:[#allocation3 + $0x18] sm:$0x1] %v428_v51  ;;  %v433_v52 = vld [vmem:[%s432_s18] sm:$0x1]  ;;  %s462_s10 = scalar_lea.vmem [#allocation2], %s1212_s25 }
  0x4d   : > { %1303 = vmatmul.mubr.f32.vlgmr.msra.gmra.mxu0 %v472_v49  ;;  %434 = vst [vmem:[#allocation3 + $0x19] sm:$0x1] %v433_v52  ;;  %v438_v53 = vld [vmem:[%s437_s26] sm:$0x1] }
  0x4e   : > { %439 = vst [vmem:[#allocation3 + $0x1a] sm:$0x1] %v438_v53  ;;  %v443_v54 = vld [vmem:[%s442_s27] sm:$0x1] }
  0x4f   : > { %444 = vst [vmem:[#allocation3 + $0x1b] sm:$0x1] %v443_v54  ;;  %v448_v55 = vld [vmem:[%s447_s16] sm:$0x1] }
  0x50   : > { %449 = vst [vmem:[#allocation3 + $0x1c] sm:$0x1] %v448_v55  ;;  %v453_v56 = vld [vmem:[%s452_s28] sm:$0x1] }
  0x51   : > { %454 = vst [vmem:[#allocation3 + $0x1d] sm:$0x1] %v453_v56  ;;  %v458_v57 = vld [vmem:[%s457_s22] sm:$0x1] }
  0x52   : > { %v473_v58 = vld [vmem:[#allocation3 + $0x10] sm:$0xff]  ;;  %459 = vst [vmem:[#allocation3 + $0x1e] sm:$0x1] %v458_v57 }
  0x53   : > { %v463_v59 = vld [vmem:[%s462_s10] sm:$0x1]  ;;  %1305 = vmatprep.mubr.f32.mxu0 %v473_v58 }
  0x54   : > { %464 = vst [vmem:[#allocation3 + $0x1f] sm:$0x1] %v463_v59  ;;  %v1217_v63 = vld [vmem:[%s1791_s6] ss:$0 sm:$0xff] }
  0x5b   : > { %v474_v60 = vld [vmem:[#allocation3 + $0x18] sm:$0xff] }
  0x5c   : > { %1306 = vmatmul.mubr.f32.gmra.mxu0 %v474_v60 }
  0xf3   : > { %v1314_v61 = vpop.f32.mrf.mxu1 }
  0xf5   : > { %v655_v1 = vpop.f32.mrf.mxu1 }
  0xf7   : > { %v1317_v6 = vpop.f32.mrf.mxu1 }
  0xf9   : > { %v665_v9 = vpop.f32.mrf.mxu1 }
 0x10d   : > { %v1304_v62 = vpop.f32.mrf.mxu0 }
 0x10e   : > { %v661_v0 = vadd.f32 %v1314_v61, %v1304_v62 }
 0x10f   : > { %v557_v2 = vpop.f32.mrf.mxu0 }
 0x110   : > { %v682_v3 = vadd.f32 %v1217_v63, %v661_v0  ;;  %v656_v4 = vadd.f32 %v655_v1, %v557_v2 }
 0x112   : > { %687 = vst [vmem:[#allocation5] sm:$0xff] %v682_v3  ;;  %v681_v5 = vadd.f32 %v1217_v63, %v656_v4  ;;  %v704_v14 = vmul.f32 %v682_v3, %v682_v3 }
 0x114   : > { %686 = vst [vmem:[#allocation5 + $0x10] sm:$0xff] %v681_v5  ;;  %v703_v11 = vmul.f32 %v681_v5, %v681_v5  ;;  %v691_v15 = vadd.f32 %v682_v3, %v681_v5 }
 0x116   : > { %v707_v17 = vadd.f32 %v704_v14, %v703_v11 }
 0x11c   : > { %v1307_v7 = vpop.f32.mrf.mxu0 }
 0x11d   : > { %v671_v8 = vadd.f32 %v1317_v6, %v1307_v7 }
 0x11e   : > { %v567_v10 = vpop.f32.mrf.mxu0 }
 0x11f   : > { %v684_v12 = vadd.f32 %v1217_v63, %v671_v8  ;;  %v666_v13 = vadd.f32 %v665_v9, %v567_v10 }
 0x121   : > { %689 = vst [vmem:[#allocation5 + $0x8] sm:$0xff] %v684_v12  ;;  %v683_v16 = vadd.f32 %v1217_v63, %v666_v13  ;;  %v706_v20 = vmul.f32 %v684_v12, %v684_v12 }
 0x123   : > { %688 = vst [vmem:[#allocation5 + $0x18] sm:$0xff] %v683_v16  ;;  %v692_v18 = vadd.f32 %v691_v15, %v683_v16  ;;  %v705_v19 = vmul.f32 %v683_v16, %v683_v16 }
 0x125   : > { %v693_v21 = vadd.f32 %v692_v18, %v684_v12  ;;  %v708_v22 = vadd.f32 %v707_v17, %v705_v19 }
 0x127   : > { %v694_v23 = vrot.slane %v693_v21, 4  ;;  %v709_v24 = vadd.f32 %v708_v22, %v706_v20 }
 0x129   : > { %v695_v25 = vadd.f32 %v694_v23, %v693_v21  ;;  %v710_v26 = vrot.slane %v709_v24, 4 }
 0x12b   : > { %v696_v27 = vrot.slane %v695_v25, 2  ;;  %v711_v28 = vadd.f32 %v710_v26, %v709_v24 }
 0x12d   : > { %v697_v29 = vadd.f32 %v696_v27, %v695_v25  ;;  %v712_v30 = vrot.slane %v711_v28, 2 }
 0x12f   : > { %v698_v31 = vrot.slane %v697_v29, 1  ;;  %v713_v32 = vadd.f32 %v712_v30, %v711_v28 }
 0x131   : > { %v699_v34 = vadd.f32 %v698_v31, %v697_v29  ;;  %v714_v35 = vrot.slane %v713_v32, 1 }
 0x133   : > { %v700_v37 = vadd.f32 %v699_v34, %v690_v33  ;;  %v715_v38 = vadd.f32 %v714_v35, %v713_v32 }
 0x135   : > { %701 = vst [vmem:[#allocation4] sm:$0x1] %v700_v37  ;;  %v716_v39 = vadd.f32 %v715_v38, %v702_v36 }
 0x137   : > { %717 = vst [vmem:[#allocation4 + $0x1] sm:$0x1] %v716_v39 }
 0x138 PF: > { %p718_p11 = scmp.eq.s32.totalorder %s1454_s29, 1 }
 0x139   : > { %vm724_vm1 = vcmask (%p718_p11), 1040384   ;;  %v1466_v56 = vmov (%p718_p11), 0.0   ;;  %s1467_s19 = smov (%p718_p11), 0.0  }
 0x13a   : > { %722 = sbr.rel (!%p718_p11) target bundleno = 596 (0x254), region = 86  ;;  %763 = vst [vmem:[#allocation9] sm:$0xff] (%p718_p11), %v1466_v56  ;;  %764 = vst [vmem:[#allocation9 + $0x8] sm:$0xff] (%p718_p11), %v1466_v56 }
 0x13c   : > { %v723_v40 = vld [vmem:[#allocation4] sm:$0x1] (%p718_p11) }
 0x13d   : > { %v725_v42 = vsel (%p718_p11), %vm724_vm1, %v723_v40, 0.0 }
 0x13e   : > { %v738_v41 = vld [vmem:[#allocation4 + $0x1] sm:$0x1] (%p718_p11)  ;;  %726 = vadd.xlane.f32.xlu0 (%p718_p11), %v725_v42 }
 0x13f   : > { %v739_v43 = vsel %vm724_vm1, %v738_v41, 0.0 }
 0x142   : > { %740 = vadd.xlane.f32.xlu0 %v739_v43 }
 0x1c7   : > { %v727_v44 = vpop.xlane.xlu0 %726 }
 0x1c8   : > { %v728_v45 = vrot.slane %v727_v44, 4 }
 0x1ca   : > { %v729_v46 = vadd.f32 %v728_v45, %v727_v44 }
 0x1cb   : > { %v741_v47 = vpop.xlane.xlu0 %740 }
 0x1cc   : > { %v730_v48 = vrot.slane %v729_v46, 2  ;;  %v742_v49 = vrot.slane %v741_v47, 4 }
 0x1ce   : > { %v743_v50 = vadd.f32 %v742_v49, %v741_v47  ;;  %v731_v51 = vadd.f32 %v730_v48, %v729_v46 }
 0x1d0   : > { %v744_v52 = vrot.slane %v743_v50, 2  ;;  %v732_v53 = vrot.slane %v731_v51, 1 }
 0x1d2   : > { %v745_v54 = vadd.f32 %v744_v52, %v743_v50  ;;  %v733_v55 = vadd.f32 %v732_v53, %v731_v51 }
 0x1d4   : > { %1329 = vpush %v733_v55  ;;  %v746_v57 = vrot.slane %v745_v54, 1 }
 0x1d6   : > { %v747_v58 = vadd.f32 %v746_v57, %v745_v54 }
 0x1d8   : > { %1331 = vpush %v747_v58 }
 0x205   : > { %s1330_s13 = spop %1329 }
 0x206   : > { %s737_s14 = smul.f32 0.0009765625, %s1330_s13 }
 0x208   : > { %v759_v59 = vstv %s737_s14  ;;  %s752_s12 = smul.f32 %s737_s14, %s737_s14 }
 0x209   : > { %760 = vst [vmem:[#allocation4 + $0x2] sm:$0x1] %v759_v59  ;;  %s1332_s20 = spop %1331 }
 0x20a   : > { %s751_s17 = smul.f32 0.0009765625, %s1332_s20 }
 0x20c   : > { %s753_s24 = ssub.f32 %s751_s17, %s752_s12 }
 0x20e   : > { %s754_s21 = smax.f32 %s1467_s19, %s753_s24 }
 0x20f   : > { %s755_s23 = sadd.f32 1e-05, %s754_s21 }
 0x211   : > { %v756_v60 = vstv %s755_s23 }
 0x212   : > { %1374 = vrsqrt.f32 %v756_v60 }
 0x21f   : > { %v1375_v61 = vpop.eup %1374 }
 0x220   : > { %1333 = vpush %v1375_v61 }
 0x251   : > { %s1334_s25 = spop %1333 }
 0x252   : > { %v761_v62 = vstv %s1334_s25 }
 0x253   : > { %762 = vst [vmem:[#allocation4 + $0x3] sm:$0x1] %v761_v62 }
 0x254 PF: > { %p1219_p12 = scmp.ne.s32.totalorder %s1454_s29, 1 }
 0x256   : > { %767 = sbr.rel (%p1219_p12) target bundleno = 869 (0x365), region = 90 }
 0x25b   : > { %v772_v63 = vld [vmem:[#allocation5 + $0x8] sm:$0xff]  ;;  %v1222_v0 = vld [vmem:[#allocation4 + $0x2] ss:$0 sm:$0xff]  ;;  %v1223_v1 = vld [vmem:[#allocation4 + $0x3] ss:$0 sm:$0xff]  ;;  %v773_v17 = vlaneseq  ;;  %vm931_vm3 = vcmask 261120  }
 0x25c   : > { %v789_v2 = vsub.f32 %v772_v63, %v1222_v0  ;;  %v771_v3 = vld [vmem:[#allocation5 + $0x18] sm:$0xff]  ;;  %v770_v4 = vld [vmem:[#allocation5] sm:$0xff]  ;;  %v769_v5 = vld [vmem:[#allocation5 + $0x10] sm:$0xff]  ;;  %v1468_v32 = vmov 0.0  }
 0x25d   : > { %v788_v6 = vsub.f32 %v771_v3, %v1222_v0  ;;  %v787_v7 = vsub.f32 %v770_v4, %v1222_v0  ;;  %v786_v9 = vsub.f32 %v769_v5, %v1222_v0  ;;  %v1730_v24 = vshrl.u32 %v773_v17, 7  ;;  %v1736_v27 = vld [vmem:[%s1788_s3] ss:$0 sm:$0xff] }
 0x25e   : > { %v1706_v8 = vmul.f32 %v1223_v1, %v789_v2 }
 0x25f   : > { %v1708_v10 = vmul.f32 %v1223_v1, %v788_v6  ;;  %v1710_v11 = vmul.f32 %v1223_v1, %v787_v7  ;;  %v1722_v16 = vmul.f32 %v1223_v1, %v786_v9  ;;  %vm923_vm2 = vcmp.eq.s32.totalorder %v1730_v24, %v1736_v27 }
 0x260   : > { %v1713_v12 = vmul.f32 0.70710677, %v1706_v8  ;;  %v1225_v33 = vsel %vm923_vm2, 1.0, %v1468_v32 }
 0x261   : > { %v1716_v13 = vmul.f32 0.70710677, %v1708_v10  ;;  %v1719_v14 = vmul.f32 0.70710677, %v1710_v11  ;;  %v1727_v21 = vmul.f32 0.70710677, %v1722_v16  ;;  %1326 = vmatprep.mubr.msk.f32.mxu0 %vm931_vm3, %v1225_v33 }
 0x262   : > { %v810_v15 = vand.u32 2147483647, %v1713_v12  ;;  %vm890_vm4 = vcmp.ge.f32.partialorder %v1713_v12, 0.0 }
 0x263   : > { %v809_v18 = vand.u32 2147483647, %v1716_v13  ;;  %v808_v19 = vand.u32 2147483647, %v1719_v14  ;;  %v807_v26 = vand.u32 2147483647, %v1727_v21 }
 0x264   : > { %v814_v20 = vmul.f32 0.3275911, %v810_v15  ;;  %v866_v34 = vsub.f32 0.0, %v810_v15  ;;  %vm889_vm5 = vcmp.ge.f32.partialorder %v1716_v13, 0.0  ;;  %vm888_vm8 = vcmp.ge.f32.partialorder %v1719_v14, 0.0 }
 0x265   : > { %v813_v22 = vmul.f32 0.3275911, %v809_v18  ;;  %v812_v23 = vmul.f32 0.3275911, %v808_v19  ;;  %v811_v30 = vmul.f32 0.3275911, %v807_v26 }
 0x266   : > { %v818_v25 = vadd.f32 1.0, %v814_v20  ;;  %v865_v35 = vsub.f32 0.0, %v809_v18  ;;  %v870_v36 = vmul.f32 %v866_v34, %v810_v15  ;;  %v864_v37 = vsub.f32 0.0, %v808_v19 }
 0x267   : > { %v817_v28 = vadd.f32 1.0, %v813_v22  ;;  %v816_v29 = vadd.f32 1.0, %v812_v23  ;;  %v815_v31 = vadd.f32 1.0, %v811_v30  ;;  %v863_v39 = vsub.f32 0.0, %v807_v26 }
 0x268   : > { %1376 = vrcp.f32 %v818_v25  ;;  %v869_v38 = vmul.f32 %v865_v35, %v809_v18  ;;  %v877_v40 = vmul.f32 1.442695, %v870_v36  ;;  %v868_v41 = vmul.f32 %v864_v37, %v808_v19 }
 0x269   : > { %1378 = vrcp.f32 %v817_v28  ;;  %v867_v46 = vmul.f32 %v863_v39, %v807_v26  ;;  %v774_v35 = vand.u32 127, %v773_v17  ;;  %v801_v17 = vmul.f32 0.5, %v1708_v10 }
 0x26a   : > { %1380 = vrcp.f32 %v816_v29  ;;  %v875_v43 = vmul.f32 1.442695, %v869_v38  ;;  %v873_v49 = vmul.f32 1.442695, %v868_v41  ;;  %vm887_vm9 = vcmp.ge.f32.partialorder %v1727_v21, 0.0 }
 0x26b   : > { %1382 = vrcp.f32 %v815_v31  ;;  %v871_v54 = vmul.f32 1.442695, %v867_v46  ;;  %vm775_vm6 = vcmp.lt.s32.totalorder %v774_v35, 32  ;;  %vm778_vm7 = vcmp.eq.s32.totalorder %v774_v35, 32 }
 0x26c   : > { %1384 = vpow2.f32 %v877_v40  ;;  %v1220_v12 = vsel %vm775_vm6, 1.0, %v1468_v32 }
 0x26d   : > { %1386 = vpow2.f32 %v875_v43 }
 0x26e   : > { %1388 = vpow2.f32 %v873_v49 }
 0x26f   : > { %1390 = vpow2.f32 %v871_v54 }
 0x275   : > { %v1377_v42 = vpop.eup %1376 }
 0x276   : > { %v1379_v44 = vpop.eup %1378  ;;  %v830_v45 = vmul.f32 1.0614054, %v1377_v42 }
 0x277   : > { %v829_v47 = vmul.f32 1.0614054, %v1379_v44  ;;  %v1381_v50 = vpop.eup %1380 }
 0x278   : > { %v834_v48 = vadd.f32 -1.4531521, %v830_v45  ;;  %v828_v53 = vmul.f32 1.0614054, %v1381_v50  ;;  %v1383_v55 = vpop.eup %1382 }
 0x279   : > { %v833_v51 = vadd.f32 -1.4531521, %v829_v47  ;;  %v827_v59 = vmul.f32 1.0614054, %v1383_v55  ;;  %v1385_v20 = vpop.eup %1384 }
 0x27a   : > { %v838_v52 = vmul.f32 %v1377_v42, %v834_v48  ;;  %v832_v58 = vadd.f32 -1.4531521, %v828_v53  ;;  %v1387_v23 = vpop.eup %1386 }
 0x27b   : > { %v837_v56 = vmul.f32 %v1379_v44, %v833_v51  ;;  %v831_v63 = vadd.f32 -1.4531521, %v827_v59  ;;  %v1389_v34 = vpop.eup %1388 }
 0x27c   : > { %v842_v57 = vadd.f32 1.4214138, %v838_v52  ;;  %v836_v62 = vmul.f32 %v1381_v50, %v832_v58  ;;  %v1391_v40 = vpop.eup %1390 }
 0x27d   : > { %v841_v60 = vadd.f32 1.4214138, %v837_v56  ;;  %v835_v3 = vmul.f32 %v1383_v55, %v831_v63 }
 0x27e   : > { %v846_v61 = vmul.f32 %v1377_v42, %v842_v57  ;;  %v840_v2 = vadd.f32 1.4214138, %v836_v62 }
 0x27f   : > { %v845_v0 = vmul.f32 %v1379_v44, %v841_v60  ;;  %v839_v7 = vadd.f32 1.4214138, %v835_v3  ;;  %v799_v60 = vmul.f32 0.5, %v1722_v16 }
 0x280   : > { %v850_v1 = vadd.f32 -0.28449672, %v846_v61  ;;  %v844_v6 = vmul.f32 %v1381_v50, %v840_v2 }
 0x281   : > { %v849_v4 = vadd.f32 -0.28449672, %v845_v0  ;;  %v843_v19 = vmul.f32 %v1383_v55, %v839_v7  ;;  %v929_v7 = vld [vmem:[#allocation9] sm:$0xff] }
 0x282   : > { %v854_v5 = vmul.f32 %v1377_v42, %v850_v1  ;;  %v848_v18 = vadd.f32 -0.28449672, %v844_v6  ;;  %v917_v1 = vadd.s32 8, %v1730_v24  ;;  %v930_v24 = vld [vmem:[#allocation9 + $0x8] sm:$0xff] }
 0x283   : > { %v853_v9 = vmul.f32 %v1379_v44, %v849_v4  ;;  %v847_v28 = vadd.f32 -0.28449672, %v843_v19 }
 0x284   : > { %v858_v15 = vadd.f32 0.2548296, %v854_v5  ;;  %v852_v26 = vmul.f32 %v1381_v50, %v848_v18  ;;  %vm924_vm10 = vcmp.eq.s32.totalorder %v917_v1, %v1736_v27 }
 0x285   : > { %v857_v22 = vadd.f32 0.2548296, %v853_v9  ;;  %v851_v33 = vmul.f32 %v1383_v55, %v847_v28  ;;  %v1226_v5 = vsel %vm924_vm10, 1.0, %v1468_v32 }
 0x286   : > { %v862_v25 = vmul.f32 %v1377_v42, %v858_v15  ;;  %v856_v31 = vadd.f32 0.2548296, %v852_v26 }
 0x287   : > { %v861_v29 = vmul.f32 %v1379_v44, %v857_v22  ;;  %v855_v39 = vadd.f32 0.2548296, %v851_v33  ;;  %v802_v44 = vmul.f32 0.5, %v1706_v8  ;;  %v1221_v8 = vsel %vm778_vm7, 1.0, %v1468_v32 }
 0x288   : > { %v882_v30 = vmul.f32 %v1385_v20, %v862_v25  ;;  %v860_v38 = vmul.f32 %v1381_v50, %v856_v31 }
 0x289   : > { %v881_v36 = vmul.f32 %v1387_v23, %v861_v29  ;;  %v859_v45 = vmul.f32 %v1383_v55, %v855_v39  ;;  %v800_v55 = vmul.f32 0.5, %v1710_v11 }
 0x28a   : > { %v886_v37 = vsub.f32 1.0, %v882_v30  ;;  %v880_v42 = vmul.f32 %v1389_v34, %v860_v38 }
 0x28b   : > { %v885_v41 = vsub.f32 1.0, %v881_v36  ;;  %v879_v49 = vmul.f32 %v1391_v40, %v859_v45 }
 0x28c   : > { %v894_v43 = vsub.f32 0.0, %v886_v37  ;;  %v884_v48 = vsub.f32 1.0, %v880_v42 }
 0x28d   : > { %v893_v46 = vsub.f32 0.0, %v885_v41  ;;  %v883_v53 = vsub.f32 1.0, %v879_v49 }
 0x28e   : > { %v898_v47 = vsel %vm890_vm4, %v886_v37, %v894_v43  ;;  %v892_v13 = vsub.f32 0.0, %v884_v48 }
 0x28f   : > { %v902_v50 = vadd.f32 1.0, %v898_v47  ;;  %v897_v51 = vsel %vm889_vm5, %v885_v41, %v893_v46  ;;  %v891_v57 = vsub.f32 0.0, %v883_v53 }
 0x290   : > { %v901_v52 = vadd.f32 1.0, %v897_v51  ;;  %v896_v56 = vsel %vm888_vm8, %v884_v48, %v892_v13 }
 0x291   : > { %v906_v54 = vmul.f32 %v902_v50, %v802_v44  ;;  %v900_v59 = vadd.f32 1.0, %v896_v56  ;;  %v895_v61 = vsel %vm887_vm9, %v883_v53, %v891_v57 }
 0x292   : > { %v905_v10 = vmul.f32 %v901_v52, %v801_v17  ;;  %v899_v0 = vadd.f32 1.0, %v895_v61 }
 0x293   : > { %v910_v58 = vmul.f32 %v1220_v12, %v906_v54  ;;  %v904_v63 = vmul.f32 %v900_v59, %v800_v55 }
 0x294   : > { %v909_v14 = vmul.f32 %v1220_v12, %v905_v10  ;;  %v903_v21 = vmul.f32 %v899_v0, %v799_v60 }
 0x295   : > { %v914_v62 = vadd.f32 %v1221_v8, %v910_v58  ;;  %v908_v11 = vmul.f32 %v1220_v12, %v904_v63 }
 0x296   : > { %v913_v2 = vadd.f32 %v1221_v8, %v909_v14  ;;  %v907_v4 = vmul.f32 %v1220_v12, %v903_v21 }
 0x297   : > { %1318 = vmatprep.subr.mxu0 %v914_v62  ;;  %v912_v3 = vadd.f32 %v1221_v8, %v908_v11 }
 0x298   : > { %1319 = vmatpush3.msra.mxu0 %v914_v62  ;;  %v911_v16 = vadd.f32 %v1221_v8, %v907_v4 }
 0x299   : > { %1320 = vmatprep.subr.mxu0 %v913_v2 }
 0x29a   : > { %1321 = vmatpush3.msra.mxu0 %v913_v2 }
 0x29b   : > { %1322 = vmatprep.subr.mxu0 %v912_v3 }
 0x29c   : > { %1323 = vmatpush3.msra.mxu0 %v912_v3 }
 0x29d   : > { %1324 = vmatprep.subr.mxu0 %v911_v16 }
 0x29e   : > { %1325 = vmatpush3.msra.mxu0 %v911_v16 }
 0x29f   : > { %1327 = vmatmul.mubr.msk.f32.vlgmr.msra.gmra.mxu0 %vm931_vm3, %v1226_v5 }
 0x35f   : > { %v1328_v6 = vpop.f32.mrf.mxu0 }
 0x360   : > { %v1014_v9 = vadd.f32 %v1328_v6, %v930_v24 }
 0x361   : > { %v1004_v15 = vpop.f32.mrf.mxu0 }
 0x362   : > { %1016 = vst [vmem:[#allocation9 + $0x8] sm:$0xff] %v1014_v9  ;;  %v1013_v18 = vadd.f32 %v1004_v15, %v929_v7 }
 0x364   : > { %1015 = vst [vmem:[#allocation9] sm:$0xff] %v1013_v18 }
 0x365 PF: > { %1018 = sbr.rel (!%p718_p11) target bundleno = 1040 (0x410), region = 94  ;;  %v1019_v27 = vlaneseq (%p718_p11)  ;;  %v1469_v32 = vmov (%p718_p11), 0.0  }
 0x367   : > { %v1020_v19 = vand.u32 (%p718_p11), 127, %v1019_v27 }
 0x369   : > { %vm1024_vm11 = vcmp.eq.s32.totalorder (%p718_p11), %v1020_v19, 32  ;;  %vm1021_vm12 = vcmp.lt.s32.totalorder (%p718_p11), %v1020_v19, 32  ;;  %v1028_v25 = vld [vmem:[#allocation9 + $0x8] sm:$0xff] (%p718_p11) }
 0x36a   : > { %v1230_v22 = vsel %vm1024_vm11, 1.0, %v1469_v32  ;;  %v1229_v23 = vsel %vm1021_vm12, 1.0, %v1469_v32 }
 0x36b   : > { %v1027_v20 = vld [vmem:[#allocation9] sm:$0xff]  ;;  %v1030_v28 = vmul.f32 %v1230_v22, %v1028_v25  ;;  %v1036_v37 = vmul.f32 %v1229_v23, %v1028_v25 }
 0x36c   : > { %v1029_v26 = vmul.f32 %v1230_v22, %v1027_v20  ;;  %v1035_v34 = vmul.f32 %v1229_v23, %v1027_v20 }
 0x36e   : > { %1031 = vadd.xlane.f32.xlu0 %v1029_v26 }
 0x372   : > { %1033 = vadd.xlane.f32.xlu0 %v1030_v28 }
 0x3f7   : > { %v1032_v29 = vpop.xlane.xlu0 %1031 }
 0x3f8   : > { %v1039_v30 = vmax.f32 %v1032_v29, 1.0  ;;  %vm1037_vm13 = vcmp.gt.f32.partialorder %v1032_v29, 0.0 }
 0x3fa   : > { %1392 = vrcp.f32 %v1039_v30 }
 0x3fb   : > { %v1034_v31 = vpop.xlane.xlu0 %1033 }
 0x3fc   : > { %v1040_v33 = vmax.f32 %v1034_v31, 1.0  ;;  %vm1038_vm14 = vcmp.gt.f32.partialorder %v1034_v31, 0.0 }
 0x3fe   : > { %1394 = vrcp.f32 %v1040_v33 }
 0x407   : > { %v1393_v35 = vpop.eup %1392 }
 0x408   : > { %v1042_v36 = vmul.f32 %v1393_v35, %v1035_v34 }
 0x40a   : > { %v1049_v38 = vsel %vm1037_vm13, %v1042_v36, 0.0 }
 0x40b   : > { %v1395_v39 = vpop.eup %1394  ;;  %1051 = vst [vmem:[#allocation9] sm:$0xff] %v1049_v38 }
 0x40c   : > { %v1044_v40 = vmul.f32 %v1395_v39, %v1036_v37 }
 0x40e   : > { %v1050_v41 = vsel %vm1038_vm14, %v1044_v40, 0.0 }
 0x40f   : > { %1052 = vst [vmem:[#allocation9 + $0x8] sm:$0xff] %v1050_v41 }
 0x410 PF: > { %p1761_p13 = scmp.eq.s32.totalorder %s1175_s0, 1  ;;  %s1470_s27 = smov [#allocation9]  }
 0x411   : > { %s1059_s16 = sshll.u32 %s1470_s27, 4  ;;  %s1060_s16 = int_to_ptr.vmem [resolvable:$true] %s1059_s16 }
 0x412   : > { %s1408_s28 = scalar_lea.vmem %s1060_s16, 256  ;;  %p1415_p3 = scmp.lt.s32.totalorder %s1060_s16, %s1060_s16 }
 0x413   : > { %p1409_p0 = scmp.ne.s32.totalorder %s1060_s16, %s1408_s28  ;;  %p1416_p4 = scmp.lt.s32.totalorder %s1408_s28, %s1408_s28 }
 0x415   : > { %p1410_p1 = pnand %p1409_p0, %p1761_p13  ;;  %p1417_p5 = por %p1416_p4, %p1415_p3 }
 0x417   : > { %p1411_p2 = pneg %p1410_p1 }
 0x419   : > { %p1418_p6 = pnand %p1417_p5, %p1411_p2 }
 0x41b   : > { %1421 = shalt.err (!%p1418_p6)
}
 0x41c   : > { %s1471_s22 = smov 128   ;;  %s1472_s0 = smov 8  }
 0x41d   : > { %1336 = dma.vmem_to_hbm [thread:$0]  (%p1761_p13), %s1060_s16, 256, %s1792_s7, [#allocation10], %s1471_s22, %s1471_s22, %s1472_s0  }
 0x41e   : > { %1449 = dma.done.wait (%p1761_p13), [#allocation10], 256  }
 0x41f   : > { %1451 = vsyncadd (%p1761_p13), [#allocation10], 4294967040 }
 0x420 PF: > { %s24_s8 = sadd.s32 1, %s1462_s8   ;;  %s1794_s29 = smov %s1458_s30 }
 0x421   : > { %p21_p7 = scmp.ge.s32.totalorder %s24_s8, 4   ;;  %s1795_s30 = smov %s1797_s9 }
 0x423   :  { %23 = sbr.rel (!%p21_p7) target bundleno = 17 (0x11), region = 166 }
 0x428   :  { %1075 = vsyncpa [#allocation10], 1 }
 0x429   :  { %1077 = vsyncpa [#allocation10 + $0x1], 1 }
 0x42a   :  { %1078 = vsyncmov [#allocation6] }
 0x42d   :  { %s1079_s15 = vpop.sfrf %1078 }
 0x42e   :  { %p1235_p8 = scmp.ne.s32.totalorder %s1079_s15, 0 }
 0x430   :  { %1083 = shalt.err (%p1235_p8)  }

</bundles_post_ra>
